<compile_context>
chip_gen: v6e
topology: v6e:2x2x1
jax: 0.10.0
libtpu: 0.0.40
codegen_flags: <defaults>
</compile_context>

<pallas_src>
import functools

import jax
import jax.numpy as jnp
from jax import lax
from jax.experimental import pallas as pl
from jax.experimental.pallas import tpu as pltpu

HIDDEN = 256
OUT_PAD = 128          # final Linear(256, 1) padded to 128 lanes for the MXU
EPS = 1e-5
NEG_SLOPE = 0.2
_MIB = 1 << 20


def _leaky_relu(x, slope=NEG_SLOPE):
    return jnp.where(x >= 0, x, slope * x)


def _round_up(n, m):
    return ((n + m - 1) // m) * m


def _vmem_capacity_bytes():
    try:
        return int(pltpu.get_tpu_info().vmem_capacity_bytes)
    except Exception:
        return 64 * _MIB          # conservative default (v7x per-core VMEM)


def _compiler_params(semantics, need_bytes, vmem_cap):
    """Only raise the scoped-VMEM limit when the working set needs it."""
    vmem_limit = None
    if need_bytes > 12 * _MIB:
        vmem_limit = int(min(need_bytes * 5 // 4 + 4 * _MIB, (vmem_cap * 3) // 4))
    return pltpu.CompilerParams(dimension_semantics=semantics,
                                vmem_limit_bytes=vmem_limit)


def _choose_tile_b(batch, nx_pad, vmem_cap):
    """Batch tile: multiple of 128 (lane-dense transposed output, aligned transposes)."""
    if batch <= 512:
        return max(128, _round_up(batch, 128))
    # Large batches: 1024-row tiles on 128-MiB-VMEM parts (v5e/v6e), 512 on v7x.
    if vmem_cap >= 96 * _MIB and batch >= 1024 and nx_pad <= 4096:
        return 1024
    return 512


# --------------------------- fused single-pass kernel -------------------------

def _fused_kernel(x_ref, w1_ref, b1_ref, w2_ref, gamma_ref, beta_ref,
                  w3_ref, b3_ref, o_ref, h2_vmem, ssum, ssq, *, tile_b, batch):
    p = pl.program_id(0)          # phase: 0 = forward + stats, 1 = BN + head
    i = pl.program_id(1)          # batch tile

    @pl.when((p == 0) & (i == 0))
    def _init():
        ssum[...] = jnp.zeros_like(ssum)
        ssq[...] = jnp.zeros_like(ssq)

    @pl.when(p == 0)
    def _phase0():
        xb = x_ref[...].astype(jnp.bfloat16)
        h1 = jnp.dot(xb, w1_ref[...],
                     preferred_element_type=jnp.float32) + b1_ref[...]
        h1 = _leaky_relu(h1)
        # Linear(256, 256); b2 dropped: BatchNorm's batch-mean subtraction
        # cancels a per-feature constant bias exactly.
        h2 = jnp.dot(h1.astype(jnp.bfloat16), w2_ref[...],
                     preferred_element_type=jnp.float32)
        h2_vmem[i] = h2.astype(jnp.bfloat16)      # stays in VMEM, never hits HBM
        # Full-batch BN statistics; mask zero-padded batch rows.
        row = lax.broadcasted_iota(jnp.int32, h2.shape, 0) + i * tile_b
        h2m = jnp.where(row < batch, h2, 0.0)
        ssum[...] += jnp.sum(h2m, axis=0, keepdims=True)
        ssq[...] += jnp.sum(h2m * h2m, axis=0, keepdims=True)

    @pl.when(p == 1)
    def _phase1():
        inv_n = jnp.float32(1.0 / batch)
        mean = ssum[...] * inv_n
        var = ssq[...] * inv_n - mean * mean      # biased batch variance
        scale = gamma_ref[...] * lax.rsqrt(var + EPS)
        shift = beta_ref[...] - mean * scale
        h = h2_vmem[i].astype(jnp.float32) * scale + shift
        h = _leaky_relu(h)
        out = jnp.dot(h.astype(jnp.bfloat16), w3_ref[...],
                      preferred_element_type=jnp.float32) + b3_ref[...]
        # De-pad the output: transpose (tile_b,128)->(128,tile_b) on the XLU and
        # store only the first 8 sublanes (row 0 is the real score column).
        o_ref[...] = jnp.transpose(out)[0:8, :][None]


# ----------------- two-pass fallback: pass 1 (x -> h2 + BN partials) ----------

def _pass1_kernel(x_ref, w1_ref, b1_ref, w2_ref, h2_ref, ssum_ref, ssq_ref,
                  *, tile_b, batch):
    i = pl.program_id(0)
    xb = x_ref[...].astype(jnp.bfloat16)
    h1 = _leaky_relu(jnp.dot(xb, w1_ref[...],
                             preferred_element_type=jnp.float32) + b1_ref[...])
    h2 = jnp.dot(h1.astype(jnp.bfloat16), w2_ref[...],
                 preferred_element_type=jnp.float32)
    h2_ref[...] = h2.astype(jnp.bfloat16)     # bf16 round-trip: half the HBM traffic
    row = lax.broadcasted_iota(jnp.int32, h2.shape, 0) + i * tile_b
    h2m = jnp.where(row < batch, h2, 0.0)
    # Per-tile partial sums (no cross-step accumulator): grid axis can be
    # "parallel" and shard across both v7x TensorCores.  Row 0 of the 8-row
    # slab is the payload; 8 rows keep the block (8,128)-tile aligned.
    s = jnp.sum(h2m, axis=0, keepdims=True)
    sq = jnp.sum(h2m * h2m, axis=0, keepdims=True)
    ssum_ref[...] = jnp.broadcast_to(s[:, None, :], (1, 8, HIDDEN))
    ssq_ref[...] = jnp.broadcast_to(sq[:, None, :], (1, 8, HIDDEN))


# ------------- two-pass fallback: pass 2 (BN fold -> LeakyReLU -> head) -------

def _pass2_kernel(h2_ref, ssum_ref, ssq_ref, gamma_ref, beta_ref,
                  w3_ref, b3_ref, o_ref, *, inv_n):
    # BN fold recomputed per tile from the full-batch sums (tiny VPU/EUP work);
    # keeps the grid axis "parallel" (no step-0 scratch dependency).
    inv_n = jnp.float32(inv_n)
    mean = ssum_ref[...] * inv_n
    var = ssq_ref[...] * inv_n - mean * mean
    scale = gamma_ref[...] * lax.rsqrt(var + EPS)
    shift = beta_ref[...] - mean * scale
    h = _leaky_relu(h2_ref[...].astype(jnp.float32) * scale + shift)
    out = jnp.dot(h.astype(jnp.bfloat16), w3_ref[...],
                  preferred_element_type=jnp.float32) + b3_ref[...]
    o_ref[...] = jnp.transpose(out)[0:8, :][None]


# ----------------------------- wrapper / dispatch ------------------------------

def prepare_params(params, nx):
    """One-time pad/cast of the weights (hoisted out of the per-call hot path)."""
    nx_pad = _round_up(nx, 128)
    w1 = jnp.zeros((nx_pad, HIDDEN), jnp.bfloat16).at[:nx, :].set(
        params["w1"].astype(jnp.bfloat16))
    w3 = jnp.zeros((HIDDEN, OUT_PAD), jnp.bfloat16).at[:, :1].set(
        params["w3"].astype(jnp.bfloat16))
    b3 = jnp.zeros((1, OUT_PAD), jnp.float32).at[:, :1].set(
        params["b3"].astype(jnp.float32))
    return {
        "w1": w1,
        "b1": params["b1"].astype(jnp.float32).reshape(1, HIDDEN),
        "w2": params["w2"].astype(jnp.bfloat16),
        "gamma": params["gamma"].astype(jnp.float32).reshape(1, HIDDEN),
        "beta": params["beta"].astype(jnp.float32).reshape(1, HIDDEN),
        "w3": w3,
        "b3": b3,
    }


def discriminator_forward(x, prepped, *, force_two_pass=False, tile_b=None):
    """x: (B, nx) float.  Returns (B, 1) float32 (training-mode BatchNorm)."""
    B, nx = x.shape
    nx_pad = prepped["w1"].shape[0]
    vmem_cap = _vmem_capacity_bytes()
    if tile_b is None:
        tile_b = _choose_tile_b(B, nx_pad, vmem_cap)
    assert tile_b % 128 == 0
    B_pad = _round_up(B, tile_b)
    n_tiles = B_pad // tile_b

    needs_pad = (nx != nx_pad) or (B != B_pad)
    if needs_pad:
        x_in = jnp.zeros((B_pad, nx_pad), jnp.bfloat16).at[:B, :nx].set(
            x.astype(jnp.bfloat16))
    else:
        x_in = x          # aligned: skip the materialized pad/copy, cast in-kernel
    x_bytes = x_in.dtype.itemsize

    w1, b1, w2 = prepped["w1"], prepped["b1"], prepped["w2"]
    gamma, beta = prepped["gamma"], prepped["beta"]
    w3, b3 = prepped["w3"], prepped["b3"]

    # Rough VMEM working-set estimates (weights/activations double-buffered).
    w_bytes = 2 * (w1.size * 2 + w2.size * 2 + w3.size * 2
                   + (b1.size + gamma.size + beta.size + b3.size) * 4)
    h2_scratch_bytes = B_pad * HIDDEN * 2
    fused_need = (h2_scratch_bytes
                  + 2 * (tile_b * nx_pad * x_bytes + 8 * tile_b * 4)
                  + w_bytes + 2 * _MIB)
    use_fused = (not force_two_pass) and fused_need <= (vmem_cap * 9) // 16

    if use_fused:
        out3 = pl.pallas_call(
            functools.partial(_fused_kernel, tile_b=tile_b, batch=B),
            grid=(2, n_tiles),
            in_specs=[
                # x only needed in phase 0; phase 1 parks on block 0 (re-DMA elided).
                pl.BlockSpec((tile_b, nx_pad), lambda p, i: ((1 - p) * i, 0)),
                pl.BlockSpec((nx_pad, HIDDEN), lambda p, i: (0, 0)),   # w1 resident
                pl.BlockSpec((1, HIDDEN), lambda p, i: (0, 0)),        # b1
                pl.BlockSpec((HIDDEN, HIDDEN), lambda p, i: (0, 0)),   # w2
                pl.BlockSpec((1, HIDDEN), lambda p, i: (0, 0)),        # gamma
                pl.BlockSpec((1, HIDDEN), lambda p, i: (0, 0)),        # beta
                pl.BlockSpec((HIDDEN, OUT_PAD), lambda p, i: (0, 0)),  # w3 (padded)
                pl.BlockSpec((1, OUT_PAD), lambda p, i: (0, 0)),       # b3 (padded)
            ],
            # Phase-0 steps park the (unwritten) output block on a dummy slot
            # (index n_tiles) so every real block is written exactly once, in phase 1.
            out_specs=pl.BlockSpec(
                (1, 8, tile_b),
                lambda p, i: (p * i + (1 - p) * n_tiles, 0, 0)),
            out_shape=jax.ShapeDtypeStruct((n_tiles + 1, 8, tile_b), jnp.float32),
            scratch_shapes=[
                pltpu.VMEM((n_tiles, tile_b, HIDDEN), jnp.bfloat16),   # resident h2
                pltpu.VMEM((1, HIDDEN), jnp.float32),                  # sum
                pltpu.VMEM((1, HIDDEN), jnp.float32),                  # sum of squares
            ],
            compiler_params=_compiler_params(("arbitrary", "arbitrary"),
                                             fused_need, vmem_cap),
        )(x_in, w1, b1, w2, gamma, beta, w3, b3)
        return out3[:n_tiles, 0, :].reshape(B_pad)[:B, None]

    # ---------------- two-pass fallback (h2 too large for VMEM) ----------------
    pass1_need = (2 * (tile_b * nx_pad * x_bytes + tile_b * HIDDEN * 2
                       + 2 * 8 * HIDDEN * 4) + w_bytes + 2 * _MIB)
    pass1 = pl.pallas_call(
        functools.partial(_pass1_kernel, tile_b=tile_b, batch=B),
        grid=(n_tiles,),
        in_specs=[
            pl.BlockSpec((tile_b, nx_pad), lambda i: (i, 0)),
            pl.BlockSpec((nx_pad, HIDDEN), lambda i: (0, 0)),
            pl.BlockSpec((1, HIDDEN), lambda i: (0, 0)),
            pl.BlockSpec((HIDDEN, HIDDEN), lambda i: (0, 0)),
        ],
        out_specs=[
            pl.BlockSpec((tile_b, HIDDEN), lambda i: (i, 0)),          # h2 (bf16)
            pl.BlockSpec((1, 8, HIDDEN), lambda i: (i, 0, 0)),         # sum partials
            pl.BlockSpec((1, 8, HIDDEN), lambda i: (i, 0, 0)),         # sumsq partials
        ],
        out_shape=[
            jax.ShapeDtypeStruct((B_pad, HIDDEN), jnp.bfloat16),
            jax.ShapeDtypeStruct((n_tiles, 8, HIDDEN), jnp.float32),
            jax.ShapeDtypeStruct((n_tiles, 8, HIDDEN), jnp.float32),
        ],
        compiler_params=_compiler_params(("parallel",), pass1_need, vmem_cap),
    )
    h2, ssum_p, ssq_p = pass1(x_in, w1, b1, w2)

    # Tiny (n_tiles, 256) partial-sum reductions on the XLA side.
    ssum = jnp.sum(ssum_p[:, 0, :], axis=0, keepdims=True)
    ssq = jnp.sum(ssq_p[:, 0, :], axis=0, keepdims=True)

    pass2_need = (2 * (tile_b * HIDDEN * 2 + 8 * tile_b * 4) + w_bytes + 2 * _MIB)
    pass2 = pl.pallas_call(
        functools.partial(_pass2_kernel, inv_n=1.0 / B),
        grid=(n_tiles,),
        in_specs=[
            pl.BlockSpec((tile_b, HIDDEN), lambda i: (i, 0)),
            pl.BlockSpec((1, HIDDEN), lambda i: (0, 0)),               # sum
            pl.BlockSpec((1, HIDDEN), lambda i: (0, 0)),               # sumsq
            pl.BlockSpec((1, HIDDEN), lambda i: (0, 0)),               # gamma
            pl.BlockSpec((1, HIDDEN), lambda i: (0, 0)),               # beta
            pl.BlockSpec((HIDDEN, OUT_PAD), lambda i: (0, 0)),         # w3
            pl.BlockSpec((1, OUT_PAD), lambda i: (0, 0)),              # b3
        ],
        out_specs=pl.BlockSpec((1, 8, tile_b), lambda i: (i, 0, 0)),
        out_shape=jax.ShapeDtypeStruct((n_tiles, 8, tile_b), jnp.float32),
        compiler_params=_compiler_params(("parallel",), pass2_need, vmem_cap),
    )
    out3 = pass2(h2, ssum, ssq, gamma, beta, w3, b3)
    return out3[:, 0, :].reshape(B_pad)[:B, None]


# ----------------------------- params / reference -----------------------------

def init_params(key, nx, hidden=HIDDEN):
    """Deterministic PyTorch-style init (U(-1/sqrt(fan_in), 1/sqrt(fan_in)))."""
    ks = jax.random.split(key, 6)

    def lin(kw, kb, fan_in, fan_out):
        bound = 1.0 / jnp.sqrt(fan_in)
        w = jax.random.uniform(kw, (fan_in, fan_out), jnp.float32, -bound, bound)
        b = jax.random.uniform(kb, (1, fan_out), jnp.float32, -bound, bound)
        return w, b

    w1, b1 = lin(ks[0], ks[1], nx, hidden)
    w2, b2 = lin(ks[2], ks[3], hidden, hidden)
    w3, b3 = lin(ks[4], ks[5], hidden, 1)
    return {
        "w1": w1, "b1": b1,
        "w2": w2, "b2": b2,      # b2 kept for the reference; cancelled by BN
        "gamma": jnp.ones((1, hidden), jnp.float32),
        "beta": jnp.zeros((1, hidden), jnp.float32),
        "w3": w3, "b3": b3,
    }


def reference_forward(x, params):
    """Pure-JAX f32 reference matching the PyTorch module (training mode)."""
    h1 = _leaky_relu(x @ params["w1"] + params["b1"])
    h2 = h1 @ params["w2"] + params["b2"]
    mean = jnp.mean(h2, axis=0, keepdims=True)
    var = jnp.mean((h2 - mean) ** 2, axis=0, keepdims=True)
    h2n = (h2 - mean) * lax.rsqrt(var + EPS) * params["gamma"] + params["beta"]
    h2n = _leaky_relu(h2n)
    return h2n @ params["w3"] + params["b3"]


if __name__ == "__main__":
    key = jax.random.PRNGKey(0)
    k_param, k_x1, k_x2, k_x3 = jax.random.split(key, 4)

    # bf16 MXU inputs / bf16 h2 storage (f32 accumulation) -> loose tolerance.
    TOL = dict(atol=8e-2, rtol=8e-2)

    # Case 1: tiny unaligned problem -> fused single-pass (h2 VMEM-resident).
    B1, nx1 = 8, 32
    params1 = init_params(k_param, nx1)
    prepped1 = prepare_params(params1, nx1)
    x1 = jax.random.normal(k_x1, (B1, nx1), jnp.float32)
    fwd = jax.jit(discriminator_forward)
    out1 = jax.block_until_ready(fwd(x1, prepped1))
    ref1 = reference_forward(x1, params1)
    assert out1.shape == (B1, 1)
    assert jnp.allclose(out1, ref1, **TOL), "fused path mismatch vs reference"

    # Case 2: same problem forced through the two-pass (bf16 h2 in HBM) fallback.
    fwd_2p = jax.jit(functools.partial(discriminator_forward, force_two_pass=True))
    out2 = jax.block_until_ready(fwd_2p(x1, prepped1))
    assert jnp.allclose(out2, ref1, **TOL), "two-pass path mismatch vs reference"

    # Case 3: multi-tile fused path (2 batch tiles, masked padded tail rows).
    B3, nx3 = 200, 128
    params3 = init_params(k_param, nx3)
    prepped3 = prepare_params(params3, nx3)
    x3 = jax.random.normal(k_x2, (B3, nx3), jnp.float32)
    fwd_t128 = jax.jit(functools.partial(discriminator_forward, tile_b=128))
    out3 = jax.block_until_ready(fwd_t128(x3, prepped3))
    ref3 = reference_forward(x3, params3)
    assert out3.shape == (B3, 1)
    assert jnp.allclose(out3, ref3, **TOL), "multi-tile fused mismatch vs reference"

    # Case 4: multi-tile two-pass path with fully aligned input (no x pad/copy).
    B4, nx4 = 256, 128
    x4 = jax.random.normal(k_x3, (B4, nx4), jnp.float32)
    fwd_2p_t128 = jax.jit(functools.partial(discriminator_forward,
                                            force_two_pass=True, tile_b=128))
    out4 = jax.block_until_ready(fwd_2p_t128(x4, prepped3))
    ref4 = reference_forward(x4, params3)
    assert jnp.allclose(out4, ref4, **TOL), "aligned two-pass mismatch vs reference"

    print("KERNEL_OK")
</pallas_src>

<mosaic_0001>
module attributes {stable_mosaic.version = 11 : i64} {
  func.func @_fused_kernel(%arg0: i32, %arg1: i32, %arg2: memref<128x128xbf16, #tpu.memory_space<vmem>>, %arg3: memref<128x256xbf16, #tpu.memory_space<vmem>>, %arg4: memref<1x256xf32, #tpu.memory_space<vmem>>, %arg5: memref<256x256xbf16, #tpu.memory_space<vmem>>, %arg6: memref<1x256xf32, #tpu.memory_space<vmem>>, %arg7: memref<1x256xf32, #tpu.memory_space<vmem>>, %arg8: memref<256x128xbf16, #tpu.memory_space<vmem>>, %arg9: memref<1x128xf32, #tpu.memory_space<vmem>>, %arg10: memref<1x8x128xf32, #tpu.memory_space<vmem>>, %arg11: memref<1x128x256xbf16, #tpu.memory_space<vmem>>, %arg12: memref<1x256xf32, #tpu.memory_space<vmem>>, %arg13: memref<1x256xf32, #tpu.memory_space<vmem>>) attributes {dimension_semantics = [#tpu.dimension_semantics<arbitrary>, #tpu.dimension_semantics<arbitrary>], iteration_bounds = array<i64: 2, 1>, scalar_prefetch = 0 : i64, scratch_operands = 3 : i64, tpu.core_type = #tpu.core_type<tc>, window_params = [{transform_indices = @transform_0, window_bounds = array<i64: 128, 128>}, {pipeline_mode = #tpu.pipeline_mode<synchronous>, transform_indices = @transform_1, window_bounds = array<i64: 128, 256>}, {pipeline_mode = #tpu.pipeline_mode<synchronous>, transform_indices = @transform_2, window_bounds = array<i64: 1, 256>}, {pipeline_mode = #tpu.pipeline_mode<synchronous>, transform_indices = @transform_3, window_bounds = array<i64: 256, 256>}, {pipeline_mode = #tpu.pipeline_mode<synchronous>, transform_indices = @transform_4, window_bounds = array<i64: 1, 256>}, {pipeline_mode = #tpu.pipeline_mode<synchronous>, transform_indices = @transform_5, window_bounds = array<i64: 1, 256>}, {pipeline_mode = #tpu.pipeline_mode<synchronous>, transform_indices = @transform_6, window_bounds = array<i64: 256, 128>}, {pipeline_mode = #tpu.pipeline_mode<synchronous>, transform_indices = @transform_7, window_bounds = array<i64: 1, 128>}, {transform_indices = @transform_8, window_bounds = array<i64: 1, 8, 128>}]} {
    %c0_i32 = arith.constant 0 : i32
    %0 = arith.cmpi eq, %arg0, %c0_i32 : i32
    %c0_i32_0 = arith.constant 0 : i32
    %1 = arith.cmpi eq, %arg1, %c0_i32_0 : i32
    %2 = arith.andi %0, %1 : i1
    %3 = arith.extui %2 : i1 to i32
    %c0_i32_1 = arith.constant 0 : i32
    %4 = arith.cmpi ne, %3, %c0_i32_1 : i32
    scf.if %4 {
      %cst = arith.constant 0.000000e+00 : f32
      %11 = vector.broadcast %cst : f32 to vector<1x256xf32>
      %c0 = arith.constant 0 : index
      %c0_5 = arith.constant 0 : index
      %12 = vector.load %arg12[%c0, %c0_5] : memref<1x256xf32, #tpu.memory_space<vmem>>, vector<1x256xf32>
      tpu.vector_store %arg12[%c0, %c0_5], %11 {strides = array<i32>} : memref<1x256xf32, #tpu.memory_space<vmem>>, vector<1x256xf32>,
      %cst_6 = arith.constant 0.000000e+00 : f32
      %13 = vector.broadcast %cst_6 : f32 to vector<1x256xf32>
      %c0_7 = arith.constant 0 : index
      %c0_8 = arith.constant 0 : index
      %14 = vector.load %arg13[%c0_7, %c0_8] : memref<1x256xf32, #tpu.memory_space<vmem>>, vector<1x256xf32>
      tpu.vector_store %arg13[%c0_7, %c0_8], %13 {strides = array<i32>} : memref<1x256xf32, #tpu.memory_space<vmem>>, vector<1x256xf32>,
    } else {
    }
    %c0_i32_2 = arith.constant 0 : i32
    %5 = arith.cmpi eq, %arg0, %c0_i32_2 : i32
    %6 = arith.extui %5 : i1 to i32
    %c0_i32_3 = arith.constant 0 : i32
    %7 = arith.cmpi ne, %6, %c0_i32_3 : i32
    scf.if %7 {
      %c0 = arith.constant 0 : index
      %c0_5 = arith.constant 0 : index
      %11 = vector.load %arg2[%c0, %c0_5] : memref<128x128xbf16, #tpu.memory_space<vmem>>, vector<128x128xbf16>
      %c0_6 = arith.constant 0 : index
      %c0_7 = arith.constant 0 : index
      %12 = vector.load %arg3[%c0_6, %c0_7] : memref<128x256xbf16, #tpu.memory_space<vmem>>, vector<128x256xbf16>
      %cst = arith.constant dense<0.000000e+00> : vector<128x256xf32>
      %13 = tpu.matmul %11, %12, %cst {dimension_numbers = #tpu.dot_dimension_numbers<[1], [0], [0], [1], [0, 0, 1, 1], [], []>} : vector<128x128xbf16>, vector<128x256xbf16>, vector<128x256xf32> -> vector<128x256xf32>
      %c0_8 = arith.constant 0 : index
      %c0_9 = arith.constant 0 : index
      %14 = vector.load %arg4[%c0_8, %c0_9] : memref<1x256xf32, #tpu.memory_space<vmem>>, vector<1x256xf32>
      %15 = vector.broadcast %14 : vector<1x256xf32> to vector<128x256xf32>
      %16 = arith.addf %13, %15 : vector<128x256xf32>
      %cst_10 = arith.constant 0.000000e+00 : f32
      %17 = vector.broadcast %cst_10 : f32 to vector<128x256xf32>
      %18 = arith.cmpf oge, %16, %17 : vector<128x256xf32>
      %cst_11 = arith.constant 2.000000e-01 : f32
      %19 = vector.broadcast %cst_11 : f32 to vector<128x256xf32>
      %20 = arith.mulf %19, %16 : vector<128x256xf32>
      %21 = arith.select %18, %16, %20 : vector<128x256xi1>, vector<128x256xf32>
      %22 = arith.truncf %21 : vector<128x256xf32> to vector<128x256xbf16>
      %c0_12 = arith.constant 0 : index
      %c0_13 = arith.constant 0 : index
      %23 = vector.load %arg5[%c0_12, %c0_13] : memref<256x256xbf16, #tpu.memory_space<vmem>>, vector<256x256xbf16>
      %cst_14 = arith.constant dense<0.000000e+00> : vector<128x256xf32>
      %24 = tpu.matmul %22, %23, %cst_14 {dimension_numbers = #tpu.dot_dimension_numbers<[1], [0], [0], [1], [0, 0, 1, 1], [], []>} : vector<128x256xbf16>, vector<256x256xbf16>, vector<128x256xf32> -> vector<128x256xf32>
      %25 = arith.truncf %24 : vector<128x256xf32> to vector<128x256xbf16>
      %26 = arith.index_cast %arg1 : i32 to index
      %c0_15 = arith.constant 0 : index
      %c0_16 = arith.constant 0 : index
      %27 = vector.load %arg11[%26, %c0_15, %c0_16] : memref<1x128x256xbf16, #tpu.memory_space<vmem>>, vector<1x128x256xbf16>
      %28 = vector.shape_cast %27 : vector<1x128x256xbf16> to vector<128x256xbf16>
      %29 = vector.shape_cast %25 : vector<128x256xbf16> to vector<1x128x256xbf16>
      tpu.vector_store %arg11[%26, %c0_15, %c0_16], %29 {strides = array<i32>} : memref<1x128x256xbf16, #tpu.memory_space<vmem>>, vector<1x128x256xbf16>,
      %30 = tpu.iota {dimensions = array<i32: 0>} : vector<128x256xi32>
      %c128_i32 = arith.constant 128 : i32
      %31 = arith.muli %arg1, %c128_i32 : i32
      %32 = vector.broadcast %31 : i32 to vector<128x256xi32>
      %33 = arith.addi %30, %32 : vector<128x256xi32>
      %c8_i32 = arith.constant 8 : i32
      %34 = vector.broadcast %c8_i32 : i32 to vector<128x256xi32>
      %35 = arith.cmpi slt, %33, %34 : vector<128x256xi32>
      %cst_17 = arith.constant 0.000000e+00 : f32
      %36 = vector.broadcast %cst_17 : f32 to vector<128x256xf32>
      %37 = arith.select %35, %24, %36 : vector<128x256xi1>, vector<128x256xf32>
      %c0_18 = arith.constant 0 : index
      %c0_19 = arith.constant 0 : index
      %38 = vector.load %arg12[%c0_18, %c0_19] : memref<1x256xf32, #tpu.memory_space<vmem>>, vector<1x256xf32>
      %cst_20 = arith.constant dense<0.000000e+00> : vector<256xf32>
      %39 = vector.multi_reduction <add>, %37, %cst_20 [0] : vector<128x256xf32> to vector<256xf32>
      %40 = vector.shape_cast %39 : vector<256xf32> to vector<1x256xf32>
      %41 = arith.addf %38, %40 : vector<1x256xf32>
      %c0_21 = arith.constant 0 : index
      %c0_22 = arith.constant 0 : index
      %42 = vector.load %arg12[%c0_21, %c0_22] : memref<1x256xf32, #tpu.memory_space<vmem>>, vector<1x256xf32>
      tpu.vector_store %arg12[%c0_21, %c0_22], %41 {strides = array<i32>} : memref<1x256xf32, #tpu.memory_space<vmem>>, vector<1x256xf32>,
      %c0_23 = arith.constant 0 : index
      %c0_24 = arith.constant 0 : index
      %43 = vector.load %arg13[%c0_23, %c0_24] : memref<1x256xf32, #tpu.memory_space<vmem>>, vector<1x256xf32>
      %44 = arith.mulf %37, %37 : vector<128x256xf32>
      %cst_25 = arith.constant dense<0.000000e+00> : vector<256xf32>
      %45 = vector.multi_reduction <add>, %44, %cst_25 [0] : vector<128x256xf32> to vector<256xf32>
      %46 = vector.shape_cast %45 : vector<256xf32> to vector<1x256xf32>
      %47 = arith.addf %43, %46 : vector<1x256xf32>
      %c0_26 = arith.constant 0 : index
      %c0_27 = arith.constant 0 : index
      %48 = vector.load %arg13[%c0_26, %c0_27] : memref<1x256xf32, #tpu.memory_space<vmem>>, vector<1x256xf32>
      tpu.vector_store %arg13[%c0_26, %c0_27], %47 {strides = array<i32>} : memref<1x256xf32, #tpu.memory_space<vmem>>, vector<1x256xf32>,
    } else {
    }
    %c1_i32 = arith.constant 1 : i32
    %8 = arith.cmpi eq, %arg0, %c1_i32 : i32
    %9 = arith.extui %8 : i1 to i32
    %c0_i32_4 = arith.constant 0 : i32
    %10 = arith.cmpi ne, %9, %c0_i32_4 : i32
    scf.if %10 {
      %c0 = arith.constant 0 : index
      %c0_5 = arith.constant 0 : index
      %11 = vector.load %arg12[%c0, %c0_5] : memref<1x256xf32, #tpu.memory_space<vmem>>, vector<1x256xf32>
      %cst = arith.constant 1.250000e-01 : f32
      %12 = vector.broadcast %cst : f32 to vector<1x256xf32>
      %13 = arith.mulf %11, %12 : vector<1x256xf32>
      %c0_6 = arith.constant 0 : index
      %c0_7 = arith.constant 0 : index
      %14 = vector.load %arg13[%c0_6, %c0_7] : memref<1x256xf32, #tpu.memory_space<vmem>>, vector<1x256xf32>
      %cst_8 = arith.constant 1.250000e-01 : f32
      %15 = vector.broadcast %cst_8 : f32 to vector<1x256xf32>
      %16 = arith.mulf %14, %15 : vector<1x256xf32>
      %17 = arith.mulf %13, %13 : vector<1x256xf32>
      %18 = arith.subf %16, %17 : vector<1x256xf32>
      %c0_9 = arith.constant 0 : index
      %c0_10 = arith.constant 0 : index
      %19 = vector.load %arg6[%c0_9, %c0_10] : memref<1x256xf32, #tpu.memory_space<vmem>>, vector<1x256xf32>
      %cst_11 = arith.constant 9.99999974E-6 : f32
      %20 = vector.broadcast %cst_11 : f32 to vector<1x256xf32>
      %21 = arith.addf %18, %20 : vector<1x256xf32>
      %22 = math.rsqrt %21 : vector<1x256xf32>
      %23 = arith.mulf %19, %22 : vector<1x256xf32>
      %c0_12 = arith.constant 0 : index
      %c0_13 = arith.constant 0 : index
      %24 = vector.load %arg7[%c0_12, %c0_13] : memref<1x256xf32, #tpu.memory_space<vmem>>, vector<1x256xf32>
      %25 = arith.mulf %13, %23 : vector<1x256xf32>
      %26 = arith.subf %24, %25 : vector<1x256xf32>
      %27 = arith.index_cast %arg1 : i32 to index
      %c0_14 = arith.constant 0 : index
      %c0_15 = arith.constant 0 : index
      %28 = vector.load %arg11[%27, %c0_14, %c0_15] : memref<1x128x256xbf16, #tpu.memory_space<vmem>>, vector<1x128x256xbf16>
      %29 = vector.shape_cast %28 : vector<1x128x256xbf16> to vector<128x256xbf16>
      %30 = arith.extf %29 : vector<128x256xbf16> to vector<128x256xf32>
      %31 = vector.broadcast %23 : vector<1x256xf32> to vector<128x256xf32>
      %32 = arith.mulf %30, %31 : vector<128x256xf32>
      %33 = vector.broadcast %26 : vector<1x256xf32> to vector<128x256xf32>
      %34 = arith.addf %32, %33 : vector<128x256xf32>
      %cst_16 = arith.constant 0.000000e+00 : f32
      %35 = vector.broadcast %cst_16 : f32 to vector<128x256xf32>
      %36 = arith.cmpf oge, %34, %35 : vector<128x256xf32>
      %cst_17 = arith.constant 2.000000e-01 : f32
      %37 = vector.broadcast %cst_17 : f32 to vector<128x256xf32>
      %38 = arith.mulf %37, %34 : vector<128x256xf32>
      %39 = arith.select %36, %34, %38 : vector<128x256xi1>, vector<128x256xf32>
      %40 = arith.truncf %39 : vector<128x256xf32> to vector<128x256xbf16>
      %c0_18 = arith.constant 0 : index
      %c0_19 = arith.constant 0 : index
      %41 = vector.load %arg8[%c0_18, %c0_19] : memref<256x128xbf16, #tpu.memory_space<vmem>>, vector<256x128xbf16>
      %cst_20 = arith.constant dense<0.000000e+00> : vector<128x128xf32>
      %42 = tpu.matmul %40, %41, %cst_20 {dimension_numbers = #tpu.dot_dimension_numbers<[1], [0], [0], [1], [0, 0, 1, 1], [], []>} : vector<128x256xbf16>, vector<256x128xbf16>, vector<128x128xf32> -> vector<128x128xf32>
      %c0_21 = arith.constant 0 : index
      %c0_22 = arith.constant 0 : index
      %43 = vector.load %arg9[%c0_21, %c0_22] : memref<1x128xf32, #tpu.memory_space<vmem>>, vector<1x128xf32>
      %44 = vector.broadcast %43 : vector<1x128xf32> to vector<128x128xf32>
      %45 = arith.addf %42, %44 : vector<128x128xf32>
      %46 = tpu.transpose %45, [1, 0] : vector<128x128xf32> -> vector<128x128xf32>
      %47 = vector.extract_strided_slice %46 {offsets = [0, 0], sizes = [8, 128], strides = [1, 1]} : vector<128x128xf32> to vector<8x128xf32>
      %48 = vector.shape_cast %47 : vector<8x128xf32> to vector<1x8x128xf32>
      %c0_23 = arith.constant 0 : index
      %c0_24 = arith.constant 0 : index
      %c0_25 = arith.constant 0 : index
      %49 = vector.load %arg10[%c0_23, %c0_24, %c0_25] : memref<1x8x128xf32, #tpu.memory_space<vmem>>, vector<1x8x128xf32>
      tpu.vector_store %arg10[%c0_23, %c0_24, %c0_25], %48 {strides = array<i32>} : memref<1x8x128xf32, #tpu.memory_space<vmem>>, vector<1x8x128xf32>,
    } else {
    }
    return
  }
  func.func @transform_0(%arg0: i32, %arg1: i32) -> (i32, i32) {
    %c1_i32 = arith.constant 1 : i32
    %0 = arith.subi %c1_i32, %arg0 : i32
    %1 = arith.muli %0, %arg1 : i32
    %c0_i32 = arith.constant 0 : i32
    %c0_i32_0 = arith.constant 0 : i32
    return %1, %c0_i32 : i32, i32
  }
  func.func @transform_1(%arg0: i32, %arg1: i32) -> (i32, i32) {
    %c0_i32 = arith.constant 0 : i32
    %c0_i32_0 = arith.constant 0 : i32
    %c0_i32_1 = arith.constant 0 : i32
    return %c0_i32, %c0_i32_0 : i32, i32
  }
  func.func @transform_2(%arg0: i32, %arg1: i32) -> (i32, i32) {
    %c0_i32 = arith.constant 0 : i32
    %c0_i32_0 = arith.constant 0 : i32
    %c0_i32_1 = arith.constant 0 : i32
    return %c0_i32, %c0_i32_0 : i32, i32
  }
  func.func @transform_3(%arg0: i32, %arg1: i32) -> (i32, i32) {
    %c0_i32 = arith.constant 0 : i32
    %c0_i32_0 = arith.constant 0 : i32
    %c0_i32_1 = arith.constant 0 : i32
    return %c0_i32, %c0_i32_0 : i32, i32
  }
  func.func @transform_4(%arg0: i32, %arg1: i32) -> (i32, i32) {
    %c0_i32 = arith.constant 0 : i32
    %c0_i32_0 = arith.constant 0 : i32
    %c0_i32_1 = arith.constant 0 : i32
    return %c0_i32, %c0_i32_0 : i32, i32
  }
  func.func @transform_5(%arg0: i32, %arg1: i32) -> (i32, i32) {
    %c0_i32 = arith.constant 0 : i32
    %c0_i32_0 = arith.constant 0 : i32
    %c0_i32_1 = arith.constant 0 : i32
    return %c0_i32, %c0_i32_0 : i32, i32
  }
  func.func @transform_6(%arg0: i32, %arg1: i32) -> (i32, i32) {
    %c0_i32 = arith.constant 0 : i32
    %c0_i32_0 = arith.constant 0 : i32
    %c0_i32_1 = arith.constant 0 : i32
    return %c0_i32, %c0_i32_0 : i32, i32
  }
  func.func @transform_7(%arg0: i32, %arg1: i32) -> (i32, i32) {
    %c0_i32 = arith.constant 0 : i32
    %c0_i32_0 = arith.constant 0 : i32
    %c0_i32_1 = arith.constant 0 : i32
    return %c0_i32, %c0_i32_0 : i32, i32
  }
  func.func @transform_8(%arg0: i32, %arg1: i32) -> (i32, i32, i32) {
    %0 = arith.muli %arg0, %arg1 : i32
    %c1_i32 = arith.constant 1 : i32
    %1 = arith.subi %c1_i32, %arg0 : i32
    %c1_i32_0 = arith.constant 1 : i32
    %2 = arith.muli %1, %c1_i32_0 : i32
    %3 = arith.addi %0, %2 : i32
    %c0_i32 = arith.constant 0 : i32
    %c0_i32_1 = arith.constant 0 : i32
    %c0_i32_2 = arith.constant 0 : i32
    return %3, %c0_i32, %c0_i32_1 : i32, i32, i32
  }
}

</mosaic_0001>

<bundles_post_ra>
// kernel: discriminator_forward.1
= control target key start
LH: loop header
LB: loop body
LE: loop exit
PB: predicated region body
PF: predicated region fallthrough
CT: control target
= control target key end

     0   :  { %13 = vsyncpa [#allocation6], 0  ;;  %s3039_s0 = inlined_call_operand.vmem [shape: bf16[128,128], index: 0, kind: input, shape index: {}]   ;;  %s3040_s1 = inlined_call_operand.hbm [shape: bf16[128,256], index: 1, kind: input, shape index: {}]   ;;  %s3041_s2 = inlined_call_operand.vmem [shape: f32[1,256], index: 2, kind: input, shape index: {}]   ;;  %s3042_s3 = inlined_call_operand.hbm [shape: bf16[256,256], index: 3, kind: input, shape index: {}]   ;;  %s3043_s4 = inlined_call_operand.vmem [shape: f32[1,256], index: 4, kind: input, shape index: {}]   ;;  %s3044_s5 = inlined_call_operand.vmem [shape: f32[1,256], index: 5, kind: input, shape index: {}]   ;;  %s3045_s6 = inlined_call_operand.hbm [shape: bf16[256,128], index: 6, kind: input, shape index: {}]   ;;  %s3046_s7 = inlined_call_operand.vmem [shape: f32[1,128], index: 7, kind: input, shape index: {}]   ;;  %s3047_s8 = inlined_call_operand.vmem [shape: f32[2,8,128], index: 8, kind: output, shape index: {}]  }
   0x1   :  { %14 = vsyncpa [#allocation8], 0  ;;  %s2667_s27 = smov 0   ;;  %s2669_s28 = smov 0  }
   0x2   :  { %s2671_s29 = smov 0  }
   0x3 LB: > { %s2106_s30 = sadd.s32 4294967295, %s2610_s29   ;;  %p2108_p0 = scmp.ge.s32.totalorder %s2610_s29, 1  ;;  %s2610_s29 = sphi %s2671_s29, %s20_s29   ;;  %s2606_s28 = sphi %s2669_s28, %s3053_s28   ;;  %s2602_s27 = sphi %s2667_s27, %s3052_s27  }
   0x4   : > { %p246_p1 = scmp.lt.s32.totalorder %s2610_s29, 3  ;;  %p2685_p2 = scmp.eq.s32.totalorder %s2106_s30, 0 }
   0x5   : > { %s2612_s11 = smov [#allocation7]   ;;  %s32_s14 = sadd.s32 1, %s2606_s28 }
   0x6   : > { %p2689_p3 = pnand %p2108_p0, %p246_p1  ;;  %s274_s12 = sshll.u32 %s2612_s11, 4  ;;  %s275_s12 = int_to_ptr.vmem [resolvable:$true] %s274_s12 }
   0x7   : > { %p2702_p6 = scmp.ge.s32.totalorder %s32_s14, 2  ;;  %s2613_s16 = smov [#allocation5]  }
   0x8   : > { %p2354_p4 = pneg %p2689_p3  ;;  %s258_s17 = sshll.u32 %s2613_s16, 4  ;;  %s259_s17 = int_to_ptr.vmem [resolvable:$true] %s258_s17 }
   0x9   : > { %s2513_s18 = scalar_lea.vmem %s275_s12, 4096  ;;  %p2521_p11 = scmp.lt.s32.totalorder %s275_s12, %s275_s12 }
   0xa   : > { %p2697_p5 = pnand %p2685_p2, %p2354_p4  ;;  %p2514_p8 = scmp.ne.s32.totalorder %s275_s12, %s2513_s18 }
   0xb   : > { %p2522_p12 = scmp.lt.s32.totalorder %s2513_s18, %s2513_s18 }
   0xc   : > { %p2504_p7 = pneg %p2697_p5 }
   0xd   : > { %p2523_p13 = por %p2522_p12, %p2521_p11 }
   0xe   : > { %p2516_p9 = pnand %p2514_p8, %p2504_p7 }
  0x10   : > { %p2517_p10 = pneg %p2516_p9 }
  0x12   : > { %p2524_p0 = pnand %p2523_p13, %p2517_p10 }
  0x14   : > { %2527 = shalt.err (!%p2524_p0)
}
  0x15   : > { %s2614_s19 = smov 128   ;;  %s2615_s20 = smov 8  }
  0x16   : > { %2360 = dma.hbm_to_vmem [thread:$0]  (!%p2697_p5), %s3042_s3, 4096, %s275_s12, [#allocation8], %s2614_s19, %s2614_s19, %s2615_s20  }
  0x17   : > { %s3055_s14 = smov (%p2702_p6, %s32_s14), 0  ;;  %s2539_s23 = scalar_lea.vmem %s259_s17, 2048 }
  0x18   : > { %p2540_p1 = scmp.ne.s32.totalorder %s259_s17, %s2539_s23  ;;  %p2547_p9 = scmp.lt.s32.totalorder %s259_s17, %s259_s17 }
  0x19   : > { %p2548_p10 = scmp.lt.s32.totalorder %s2539_s23, %s2539_s23 }
  0x1a   : > { %p2542_p4 = pnand %p2540_p1, %p2504_p7 }
  0x1b   : > { %p2549_p11 = por %p2548_p10, %p2547_p9 }
  0x1c   : > { %p2543_p8 = pneg %p2542_p4 }
  0x1e   : > { %p2550_p12 = pnand %p2549_p11, %p2543_p8 }
  0x20   : > { %2553 = shalt.err (!%p2550_p12)
}
  0x21   : > { %2357 = dma.hbm_to_vmem [thread:$0]  (!%p2697_p5), %s3040_s1, 2048, %s259_s17, [#allocation6], %s2614_s19, %s2614_s19, %s2615_s20  }
  0x22   : > { %s2616_s26 = smov [#allocation9]  }
  0x23   : > { %s293_s30 = sshll.u32 %s2616_s26, 4  ;;  %s294_s30 = int_to_ptr.vmem [resolvable:$true] %s293_s30 }
  0x24   : > { %s2565_s11 = scalar_lea.vmem %s294_s30, 2048  ;;  %p2573_p1 = scmp.lt.s32.totalorder %s294_s30, %s294_s30 }
  0x25   : > { %p2566_p6 = scmp.ne.s32.totalorder %s294_s30, %s2565_s11  ;;  %p2574_p4 = scmp.lt.s32.totalorder %s2565_s11, %s2565_s11 }
  0x27   : > { %p2568_p13 = pnand %p2566_p6, %p2504_p7  ;;  %p2575_p8 = por %p2574_p4, %p2573_p1 }
  0x29   : > { %p2569_p0 = pneg %p2568_p13 }
  0x2b   : > { %p2576_p9 = pnand %p2575_p8, %p2569_p0 }
  0x2d   : > { %2579 = shalt.err (!%p2576_p9)
}
  0x2e   : > { %s2617_s12 = smov 64   ;;  %s2618_s15 = smov 4  }
  0x2f   : > { %2363 = dma.hbm_to_vmem [thread:$0]  (!%p2697_p5), %s3045_s6, 2048, %s294_s30, [#allocation8], %s2617_s12, %s2617_s12, %s2618_s15  }
  0x30   : > { %325 = sbr.rel (%p2689_p3) target bundleno = 943 (0x3af), region = 52 }
  0x35   : > { %2593 = dma.done.wait (%p2685_p2), [#allocation6], 2048  }
  0x36   : > { %2595 = vsyncadd (%p2685_p2), [#allocation6], 4294965248 }
  0x37   : > { %2597 = dma.done.wait (%p2685_p2), [#allocation8], 6144  }
  0x38   : > { %2599 = vsyncadd (%p2685_p2), [#allocation8], 4294961152  ;;  %s382_s13 = ssub.s32 1, %s2602_s27  ;;  %p392_p7 = scmp.eq.s32.totalorder %s2602_s27, 0 }
  0x39   : > { %p384_p5 = scmp.lt.s32.totalorder %s382_s13, 1  ;;  %v398_v0 = vlaneseq (%p392_p7)  ;;  %v2619_v1 = vmov (%p392_p7), 0.0  }
  0x3a   : > { %397 = sbr.rel (!%p392_p7) target bundleno = 63 (0x3f), region = 68 }
  0x3b   : > { %s3057_s13 = smov (!%p384_p5, %s382_s13), 1  ;;  %vm400_vm0 = vcmp.lt.s32.totalorder (%p392_p7), %v398_v0, 256 }
  0x3c   : > { %s2118_s10 = sshll.u32 %s3057_s13, 3  ;;  %402 = vst.msk [vmem:[#allocation3] sm:$0x3] (%p392_p7), %vm400_vm0, %v2619_v1  ;;  %403 = vst.msk [vmem:[#allocation4] sm:$0x3] (%p392_p7), %vm400_vm0, %v2619_v1 }
  0x3d   : > { %s2751_s20 = scalar_lea.vmem %s3047_s8, %s2118_s10 }
  0x3f PF: > { %p2120_p2 = scmp.ne.s32.totalorder %s2602_s27, 0 }
  0x41   : > { %406 = sbr.rel (%p2120_p2) target bundleno = 568 (0x238), region = 72 }
  0x46   : > { %v2404_v2 = vld [vmem:[#allocation5 + $0x74] ss:$8 sps:$4 sm:$0xff]   ;;  %v2406_v3 = vld [vmem:[#allocation5 + $0x70] ss:$8 sps:$4 sm:$0xff]   ;;  %v2620_v4 = vmov 0   ;;  %v2429_v31 = vld [vmem:[%s3039_s0 + $0x8] sm:$0xff]   ;;  %v441_v59 = vlaneseq }
  0x47   : > { %611 = vmatprep.mubr.bf16.mxu0 %v2620_v4  ;;  %579 = vmatprep.subr.bf16.mxu0 %v2404_v2  ;;  %v2407_v5 = vld [vmem:[#allocation5 + $0x64] ss:$8 sps:$4 sm:$0xff]   ;;  %v2409_v6 = vld [vmem:[#allocation5 + $0x60] ss:$8 sps:$4 sm:$0xff]   ;;  %v2410_v7 = vld [vmem:[#allocation5 + $0x54] ss:$8 sps:$4 sm:$0xff]  }
  0x48   : > { %580 = vmatpush1.bf16.msra.mxu0 %v2406_v3  ;;  %v2412_v8 = vld [vmem:[#allocation5 + $0x50] ss:$8 sps:$4 sm:$0xff]   ;;  %v2413_v9 = vld [vmem:[#allocation5 + $0x44] ss:$8 sps:$4 sm:$0xff]   ;;  %v2415_v10 = vld [vmem:[#allocation5 + $0x40] ss:$8 sps:$4 sm:$0xff]  }
  0x49   : > { %581 = vmatprep.subr.bf16.mxu0 %v2407_v5  ;;  %v2416_v11 = vld [vmem:[#allocation5 + $0x34] ss:$8 sps:$4 sm:$0xff]   ;;  %v2418_v12 = vld [vmem:[#allocation5 + $0x30] ss:$8 sps:$4 sm:$0xff]   ;;  %v2419_v13 = vld [vmem:[#allocation5 + $0x24] ss:$8 sps:$4 sm:$0xff]  }
  0x4a   : > { %v2421_v14 = vld [vmem:[#allocation5 + $0x20] ss:$8 sps:$4 sm:$0xff]   ;;  %v2422_v15 = vld [vmem:[#allocation5 + $0x14] ss:$8 sps:$4 sm:$0xff]   ;;  %v2436_v17 = vld [vmem:[#allocation7 + $0x70] ss:$8 sps:$4 sm:$0xff]  }
  0x4b   : > { %v2438_v16 = vld [vmem:[#allocation7 + $0x74] ss:$8 sps:$4 sm:$0xff]   ;;  %v2441_v18 = vld [vmem:[#allocation7 + $0x64] ss:$8 sps:$4 sm:$0xff]   ;;  %v2424_v19 = vld [vmem:[#allocation5 + $0x10] ss:$8 sps:$4 sm:$0xff]  }
  0x4c   : > { %582 = vmatpush1.bf16.msra.mxu0 %v2409_v6  ;;  %2294 = vmatprep.subr.bf16.mxu1 %v2438_v16  ;;  %v2425_v20 = vld [vmem:[#allocation5 + $0x4] ss:$8 sps:$4 sm:$0xff]   ;;  %v2439_v21 = vld [vmem:[#allocation7 + $0x60] ss:$8 sps:$4 sm:$0xff]   ;;  %v2444_v22 = vld [vmem:[#allocation7 + $0x54] ss:$8 sps:$4 sm:$0xff]  }
  0x4d   : > { %583 = vmatprep.subr.bf16.mxu0 %v2410_v7  ;;  %2310 = vmatpush1.bf16.msra.mxu1 %v2436_v17  ;;  %v2427_v23 = vld [vmem:[#allocation5] ss:$8 sps:$4 sm:$0xff]   ;;  %v2442_v24 = vld [vmem:[#allocation7 + $0x50] ss:$8 sps:$4 sm:$0xff]   ;;  %v2447_v25 = vld [vmem:[#allocation7 + $0x44] ss:$8 sps:$4 sm:$0xff]  }
  0x4e   : > { %2295 = vmatprep.subr.bf16.mxu1 %v2441_v18  ;;  %v2428_v26 = vld [vmem:[%s3039_s0] sm:$0xff]   ;;  %v2448_v29 = vld [vmem:[#allocation7 + $0x30] ss:$8 sps:$4 sm:$0xff]   ;;  %v2453_v30 = vld [vmem:[#allocation7 + $0x24] ss:$8 sps:$4 sm:$0xff]   ;;  %v2787_v60 = vshrl.u32 %v441_v59, 7 }
  0x4f   : > { %v2445_v27 = vld [vmem:[#allocation7 + $0x40] ss:$8 sps:$4 sm:$0xff]   ;;  %v2450_v28 = vld [vmem:[#allocation7 + $0x34] ss:$8 sps:$4 sm:$0xff]   ;;  %v2454_v34 = vld [vmem:[#allocation7 + $0x10] ss:$8 sps:$4 sm:$0xff]  }
  0x50   : > { %584 = vmatpush1.bf16.msra.mxu0 %v2412_v8  ;;  %v2451_v32 = vld [vmem:[#allocation7 + $0x20] ss:$8 sps:$4 sm:$0xff]   ;;  %v2456_v33 = vld [vmem:[#allocation7 + $0x14] ss:$8 sps:$4 sm:$0xff]   ;;  %v2459_v35 = vld [vmem:[#allocation7 + $0x4] ss:$8 sps:$4 sm:$0xff]  }
  0x51   : > { %585 = vmatprep.subr.bf16.mxu0 %v2413_v9  ;;  %2311 = vmatpush1.bf16.msra.mxu1 %v2439_v21  ;;  %v2430_v36 = vld [vmem:[%s3039_s0 + $0x10] sm:$0xff]   ;;  %v2457_v37 = vld [vmem:[#allocation7] ss:$8 sps:$4 sm:$0xff]   ;;  %v2462_v38 = vld [vmem:[#allocation7 + $0xf4] ss:$8 sps:$4 sm:$0xff]   ;;  %v447_v61 = vsub.s32 1, %v2787_v60 }
  0x52   : > { %2296 = vmatprep.subr.bf16.mxu1 %v2444_v22  ;;  %v2460_v39 = vld [vmem:[#allocation7 + $0xf0] ss:$8 sps:$4 sm:$0xff]   ;;  %v2465_v40 = vld [vmem:[#allocation7 + $0xe4] ss:$8 sps:$4 sm:$0xff]   ;;  %v2463_v42 = vld [vmem:[#allocation7 + $0xe0] ss:$8 sps:$4 sm:$0xff]  }
  0x53   : > { %v2431_v41 = vld [vmem:[%s3039_s0 + $0x18] sm:$0xff]   ;;  %v2471_v45 = vld [vmem:[#allocation7 + $0xc4] ss:$8 sps:$4 sm:$0xff]   ;;  %v2432_v46 = vld [vmem:[%s3039_s0 + $0x20] sm:$0xff]   ;;  %v443_v62 = vsub.s32 0, %v2787_v60 }
  0x54   : > { %586 = vmatpush1.bf16.msra.mxu0 %v2415_v10  ;;  %v2468_v43 = vld [vmem:[#allocation7 + $0xd4] ss:$8 sps:$4 sm:$0xff]   ;;  %v2466_v44 = vld [vmem:[#allocation7 + $0xd0] ss:$8 sps:$4 sm:$0xff]   ;;  %v2469_v47 = vld [vmem:[#allocation7 + $0xc0] ss:$8 sps:$4 sm:$0xff]  }
  0x55   : > { %587 = vmatprep.subr.bf16.mxu0 %v2416_v11  ;;  %2312 = vmatpush1.bf16.msra.mxu1 %v2442_v24  ;;  %v2474_v48 = vld [vmem:[#allocation7 + $0xb4] ss:$8 sps:$4 sm:$0xff]   ;;  %v2472_v49 = vld [vmem:[#allocation7 + $0xb0] ss:$8 sps:$4 sm:$0xff]   ;;  %v2433_v50 = vld [vmem:[%s3039_s0 + $0x28] sm:$0xff]  }
  0x56   : > { %2297 = vmatprep.subr.bf16.mxu1 %v2447_v25  ;;  %v2434_v51 = vld [vmem:[%s3039_s0 + $0x30] sm:$0xff]   ;;  %v2435_v52 = vld [vmem:[%s3039_s0 + $0x38] sm:$0xff]   ;;  %v2475_v54 = vld [vmem:[#allocation7 + $0xa0] ss:$8 sps:$4 sm:$0xff]  }
  0x57   : > { %v2477_v53 = vld [vmem:[#allocation7 + $0xa4] ss:$8 sps:$4 sm:$0xff]   ;;  %v2480_v55 = vld [vmem:[#allocation7 + $0x94] ss:$8 sps:$4 sm:$0xff]   ;;  %v2478_v56 = vld [vmem:[#allocation7 + $0x90] ss:$8 sps:$4 sm:$0xff]  }
  0x58   : > { %588 = vmatpush1.bf16.msra.mxu0 %v2418_v12  ;;  %v2483_v57 = vld [vmem:[#allocation7 + $0x84] ss:$8 sps:$4 sm:$0xff]   ;;  %v2481_v58 = vld [vmem:[#allocation7 + $0x80] ss:$8 sps:$4 sm:$0xff]   ;;  %v439_v63 = vld [vmem:[%s3041_s2] sm:$0x3] }
  0x59   : > { %589 = vmatprep.subr.bf16.mxu0 %v2419_v13  ;;  %2313 = vmatpush1.bf16.msra.mxu1 %v2445_v27  ;;  %v2794_v0 = vrot.slane %v439_v63, %v447_v61  ;;  %v2796_v1 = vrot.slane %v439_v63, %v443_v62 }
  0x5a   : > { %2298 = vmatprep.subr.bf16.mxu1 %v2450_v28 }
  0x5c   : > { %590 = vmatpush1.bf16.msra.mxu0 %v2421_v14 }
  0x5d   : > { %591 = vmatprep.subr.bf16.mxu0 %v2422_v15  ;;  %2314 = vmatpush1.bf16.msra.mxu1 %v2448_v29 }
  0x5e   : > { %2299 = vmatprep.subr.bf16.mxu1 %v2453_v30 }
  0x60   : > { %592 = vmatpush1.bf16.msra.mxu0 %v2424_v19 }
  0x61   : > { %593 = vmatprep.subr.bf16.mxu0 %v2425_v20  ;;  %2315 = vmatpush1.bf16.msra.mxu1 %v2451_v32 }
  0x62   : > { %2300 = vmatprep.subr.bf16.mxu1 %v2456_v33 }
  0x64   : > { %594 = vmatpush1.bf16.msra.mxu0 %v2427_v23 }
  0x65   : > { %996 = vmatprep.subr.bf16.mxu0 %v2438_v16  ;;  %2316 = vmatpush1.bf16.msra.mxu1 %v2454_v34 }
  0x66   : > { %2301 = vmatprep.subr.bf16.mxu1 %v2459_v35 }
  0x67   : > { %612 = vmatmul.mubr.bf16.vlgmr.msra.gmra.mxu0 %v2428_v26 }
  0x68   : > { %621 = vmatprep.mubr.bf16.mxu0 %v2620_v4  ;;  %997 = vmatpush1.bf16.msra.mxu0 %v2436_v17 }
  0x69   : > { %998 = vmatprep.subr.bf16.mxu0 %v2441_v18  ;;  %2317 = vmatpush1.bf16.msra.mxu1 %v2457_v37 }
  0x6a   : > { %2302 = vmatprep.subr.bf16.mxu1 %v2462_v38 }
  0x6c   : > { %999 = vmatpush1.bf16.msra.mxu0 %v2439_v21 }
  0x6d   : > { %1000 = vmatprep.subr.bf16.mxu0 %v2444_v22  ;;  %2318 = vmatpush2.bf16.msra.mxu1 %v2460_v39 }
  0x6e   : > { %2303 = vmatprep.subr.bf16.mxu1 %v2465_v40 }
  0x6f   : > { %622 = vmatmul.mubr.bf16.gmra.mxu0 %v2429_v31 }
  0x70   : > { %631 = vmatprep.mubr.bf16.mxu0 %v2620_v4  ;;  %1001 = vmatpush1.bf16.msra.mxu0 %v2442_v24 }
  0x71   : > { %1002 = vmatprep.subr.bf16.mxu0 %v2447_v25  ;;  %2319 = vmatpush2.bf16.msra.mxu1 %v2463_v42 }
  0x72   : > { %2304 = vmatprep.subr.bf16.mxu1 %v2468_v43 }
  0x74   : > { %1003 = vmatpush1.bf16.msra.mxu0 %v2445_v27 }
  0x75   : > { %1004 = vmatprep.subr.bf16.mxu0 %v2450_v28  ;;  %2320 = vmatpush2.bf16.msra.mxu1 %v2466_v44 }
  0x76   : > { %2305 = vmatprep.subr.bf16.mxu1 %v2471_v45 }
  0x77   : > { %632 = vmatmul.mubr.bf16.gmra.mxu0 %v2430_v36 }
  0x78   : > { %641 = vmatprep.mubr.bf16.mxu0 %v2620_v4  ;;  %1005 = vmatpush1.bf16.msra.mxu0 %v2448_v29 }
  0x79   : > { %1006 = vmatprep.subr.bf16.mxu0 %v2453_v30  ;;  %2321 = vmatpush2.bf16.msra.mxu1 %v2469_v47 }
  0x7a   : > { %2306 = vmatprep.subr.bf16.mxu1 %v2474_v48 }
  0x7c   : > { %1007 = vmatpush1.bf16.msra.mxu0 %v2451_v32 }
  0x7d   : > { %1008 = vmatprep.subr.bf16.mxu0 %v2456_v33  ;;  %2322 = vmatpush2.bf16.msra.mxu1 %v2472_v49 }
  0x7e   : > { %2307 = vmatprep.subr.bf16.mxu1 %v2477_v53 }
  0x7f   : > { %642 = vmatmul.mubr.bf16.gmra.mxu0 %v2431_v41 }
  0x80   : > { %651 = vmatprep.mubr.bf16.mxu0 %v2620_v4  ;;  %1009 = vmatpush1.bf16.msra.mxu0 %v2454_v34 }
  0x81   : > { %1010 = vmatprep.subr.bf16.mxu0 %v2459_v35  ;;  %2323 = vmatpush2.bf16.msra.mxu1 %v2475_v54 }
  0x82   : > { %2308 = vmatprep.subr.bf16.mxu1 %v2480_v55 }
  0x84   : > { %1011 = vmatpush1.bf16.msra.mxu0 %v2457_v37 }
  0x85   : > { %1012 = vmatprep.subr.bf16.mxu0 %v2462_v38  ;;  %2324 = vmatpush2.bf16.msra.mxu1 %v2478_v56 }
  0x86   : > { %2309 = vmatprep.subr.bf16.mxu1 %v2483_v57 }
  0x87   : > { %652 = vmatmul.mubr.bf16.gmra.mxu0 %v2432_v46 }
  0x88   : > { %661 = vmatprep.mubr.bf16.mxu0 %v2620_v4  ;;  %1013 = vmatpush2.bf16.msra.mxu0 %v2460_v39 }
  0x89   : > { %1014 = vmatprep.subr.bf16.mxu0 %v2465_v40  ;;  %2325 = vmatpush2.bf16.msra.mxu1 %v2481_v58 }
  0x8c   : > { %1015 = vmatpush2.bf16.msra.mxu0 %v2463_v42 }
  0x8d   : > { %1016 = vmatprep.subr.bf16.mxu0 %v2468_v43 }
  0x8f   : > { %662 = vmatmul.mubr.bf16.gmra.mxu0 %v2433_v50 }
  0x90   : > { %671 = vmatprep.mubr.bf16.mxu0 %v2620_v4  ;;  %1017 = vmatpush2.bf16.msra.mxu0 %v2466_v44 }
  0x91   : > { %1018 = vmatprep.subr.bf16.mxu0 %v2471_v45 }
  0x94   : > { %1019 = vmatpush2.bf16.msra.mxu0 %v2469_v47 }
  0x95   : > { %1020 = vmatprep.subr.bf16.mxu0 %v2474_v48 }
  0x97   : > { %672 = vmatmul.mubr.bf16.gmra.mxu0 %v2434_v51 }
  0x98   : > { %681 = vmatprep.mubr.bf16.mxu0 %v2620_v4  ;;  %1021 = vmatpush2.bf16.msra.mxu0 %v2472_v49 }
  0x99   : > { %1022 = vmatprep.subr.bf16.mxu0 %v2477_v53 }
  0x9c   : > { %1023 = vmatpush2.bf16.msra.mxu0 %v2475_v54 }
  0x9d   : > { %1024 = vmatprep.subr.bf16.mxu0 %v2480_v55 }
  0x9f   : > { %682 = vmatmul.mubr.bf16.gmra.mxu0 %v2435_v52 }
  0xa0   : > { %1025 = vmatpush2.bf16.msra.mxu0 %v2478_v56 }
  0xa1   : > { %1026 = vmatprep.subr.bf16.mxu0 %v2483_v57 }
  0xa4   : > { %1027 = vmatpush2.bf16.msra.mxu0 %v2481_v58 }
 0x127   : > { %v613_v2 = vpop.f32.mrf.mxu0 }
 0x128   : > { %v614_v5 = vadd.f32 %v613_v2, %v2796_v1 }
 0x129   : > { %v615_v3 = vpop.f32.mrf.mxu0 }
 0x12a   : > { %v616_v4 = vadd.f32 %v615_v3, %v2794_v0  ;;  %v724_v12 = vmul.f32 0.2, %v614_v5  ;;  %vm692_vm3 = vcmp.ge.f32.partialorder %v614_v5, 0.0 }
 0x12b   : > { %v617_v6 = vpop.f32.mrf.mxu0 }
 0x12c   : > { %v618_v7 = vadd.f32 %v617_v6, %v2796_v1  ;;  %v725_v9 = vmul.f32 0.2, %v616_v4  ;;  %vm693_vm2 = vcmp.ge.f32.partialorder %v616_v4, 0.0  ;;  %v756_v20 = vsel %vm692_vm3, %v614_v5, %v724_v12 }
 0x12d   : > { %v619_v8 = vpop.f32.mrf.mxu0 }
 0x12e   : > { %vm694_vm1 = vcmp.ge.f32.partialorder %v618_v7, 0.0  ;;  %v726_v10 = vmul.f32 0.2, %v618_v7  ;;  %v620_v11 = vadd.f32 %v619_v8, %v2794_v0  ;;  %v757_v18 = vsel %vm693_vm2, %v616_v4, %v725_v9 }
 0x12f   : > { %v623_v13 = vpop.f32.mrf.mxu0 }
 0x130   : > { %vm695_vm4 = vcmp.ge.f32.partialorder %v620_v11, 0.0  ;;  %v727_v14 = vmul.f32 0.2, %v620_v11  ;;  %v758_v15 = vsel %vm694_vm1, %v618_v7, %v726_v10  ;;  %v624_v21 = vadd.f32 %v623_v13, %v2796_v1 }
 0x131   : > { %v625_v16 = vpop.f32.mrf.mxu0  ;;  %v788_v24 = vpack.c.bf16 %v758_v15, %v756_v20 }
 0x132   : > { %v626_v17 = vadd.f32 %v625_v16, %v2794_v0  ;;  %v759_v19 = vsel %vm695_vm4, %v620_v11, %v727_v14  ;;  %v728_v30 = vmul.f32 0.2, %v624_v21  ;;  %vm696_vm7 = vcmp.ge.f32.partialorder %v624_v21, 0.0 }
 0x133   : > { %v627_v22 = vpop.f32.mrf.mxu0  ;;  %v789_v23 = vpack.c.bf16 %v759_v19, %v757_v18 }
 0x134   : > { %v628_v25 = vadd.f32 %v627_v22, %v2796_v1  ;;  %v729_v27 = vmul.f32 0.2, %v626_v17  ;;  %vm697_vm6 = vcmp.ge.f32.partialorder %v626_v17, 0.0  ;;  %v760_v41 = vsel %vm696_vm7, %v624_v21, %v728_v30 }
 0x135   : > { %v629_v26 = vpop.f32.mrf.mxu0  ;;  %1028 = vmatprep.mubr.bf16.mxu0 %v789_v23 }
 0x136   : > { %vm698_vm5 = vcmp.ge.f32.partialorder %v628_v25, 0.0  ;;  %v730_v28 = vmul.f32 0.2, %v628_v25  ;;  %v630_v29 = vadd.f32 %v629_v26, %v2794_v0  ;;  %1029 = vmatmul.mubr.bf16.vlgmr.msra.gmra.mxu0 %v788_v24  ;;  %v761_v36 = vsel %vm697_vm6, %v626_v17, %v729_v27 }
 0x137   : > { %v633_v31 = vpop.f32.mrf.mxu0 }
 0x138   : > { %vm699_vm8 = vcmp.ge.f32.partialorder %v630_v29, 0.0  ;;  %v731_v32 = vmul.f32 0.2, %v630_v29  ;;  %v762_v34 = vsel %vm698_vm5, %v628_v25, %v730_v28  ;;  %v634_v38 = vadd.f32 %v633_v31, %v2796_v1 }
 0x139   : > { %v635_v33 = vpop.f32.mrf.mxu0  ;;  %v790_v43 = vpack.c.bf16 %v762_v34, %v760_v41 }
 0x13a   : > { %v636_v35 = vadd.f32 %v635_v33, %v2794_v0  ;;  %v763_v37 = vsel %vm699_vm8, %v630_v29, %v731_v32  ;;  %v732_v48 = vmul.f32 0.2, %v634_v38  ;;  %vm700_vm11 = vcmp.ge.f32.partialorder %v634_v38, 0.0 }
 0x13b   : > { %v637_v39 = vpop.f32.mrf.mxu0  ;;  %v791_v40 = vpack.c.bf16 %v763_v37, %v761_v36 }
 0x13c   : > { %v638_v42 = vadd.f32 %v637_v39, %v2796_v1  ;;  %v733_v45 = vmul.f32 0.2, %v636_v35  ;;  %vm701_vm10 = vcmp.ge.f32.partialorder %v636_v35, 0.0  ;;  %v764_v61 = vsel %vm700_vm11, %v634_v38, %v732_v48 }
 0x13d   : > { %v639_v44 = vpop.f32.mrf.mxu0  ;;  %1038 = vmatprep.mubr.bf16.mxu0 %v791_v40 }
 0x13e   : > { %vm702_vm9 = vcmp.ge.f32.partialorder %v638_v42, 0.0  ;;  %v734_v46 = vmul.f32 0.2, %v638_v42  ;;  %v640_v47 = vadd.f32 %v639_v44, %v2794_v0  ;;  %1039 = vmatmul.mubr.bf16.gmra.mxu0 %v790_v43  ;;  %v765_v54 = vsel %vm701_vm10, %v636_v35, %v733_v45 }
 0x13f   : > { %v643_v49 = vpop.f32.mrf.mxu0 }
 0x140   : > { %v735_v50 = vmul.f32 0.2, %v640_v47  ;;  %vm703_vm12 = vcmp.ge.f32.partialorder %v640_v47, 0.0  ;;  %v766_v52 = vsel %vm702_vm9, %v638_v42, %v734_v46  ;;  %v644_v56 = vadd.f32 %v643_v49, %v2796_v1 }
 0x141   : > { %v645_v51 = vpop.f32.mrf.mxu0  ;;  %v792_v63 = vpack.c.bf16 %v766_v52, %v764_v61 }
 0x142   : > { %v646_v53 = vadd.f32 %v645_v51, %v2794_v0  ;;  %v767_v55 = vsel %vm703_vm12, %v640_v47, %v735_v50  ;;  %v736_v6 = vmul.f32 0.2, %v644_v56  ;;  %vm704_vm15 = vcmp.ge.f32.partialorder %v644_v56, 0.0 }
 0x143   : > { %v647_v57 = vpop.f32.mrf.mxu0  ;;  %v793_v58 = vpack.c.bf16 %v767_v55, %v765_v54 }
 0x144   : > { %v648_v62 = vadd.f32 %v647_v57, %v2796_v1  ;;  %v737_v3 = vmul.f32 0.2, %v646_v53  ;;  %vm705_vm14 = vcmp.ge.f32.partialorder %v646_v53, 0.0  ;;  %v768_v17 = vsel %vm704_vm15, %v644_v56, %v736_v6 }
 0x145   : > { %v649_v2 = vpop.f32.mrf.mxu0  ;;  %1048 = vmatprep.mubr.bf16.mxu1 %v793_v58 }
 0x146   : > { %vm706_vm13 = vcmp.ge.f32.partialorder %v648_v62, 0.0  ;;  %v738_v4 = vmul.f32 0.2, %v648_v62  ;;  %v650_v5 = vadd.f32 %v649_v2, %v2794_v0  ;;  %1049 = vmatmul.mubr.bf16.vlgmr.msra.gmra.mxu1 %v792_v63  ;;  %v769_v12 = vsel %vm705_vm14, %v646_v53, %v737_v3 }
 0x147   : > { %v653_v7 = vpop.f32.mrf.mxu0 }
 0x148   : > { %vm707_vm0 = vcmp.ge.f32.partialorder %v650_v5, 0.0  ;;  %v739_v8 = vmul.f32 0.2, %v650_v5  ;;  %v770_v10 = vsel %vm706_vm13, %v648_v62, %v738_v4  ;;  %v654_v14 = vadd.f32 %v653_v7, %v2796_v1 }
 0x149   : > { %v655_v9 = vpop.f32.mrf.mxu0  ;;  %v794_v19 = vpack.c.bf16 %v770_v10, %v768_v17 }
 0x14a   : > { %v656_v11 = vadd.f32 %v655_v9, %v2794_v0  ;;  %v771_v13 = vsel %vm707_vm0, %v650_v5, %v739_v8  ;;  %v740_v24 = vmul.f32 0.2, %v654_v14  ;;  %vm708_vm3 = vcmp.ge.f32.partialorder %v654_v14, 0.0 }
 0x14b   : > { %v657_v15 = vpop.f32.mrf.mxu0  ;;  %v795_v16 = vpack.c.bf16 %v771_v13, %v769_v12 }
 0x14c   : > { %v658_v18 = vadd.f32 %v657_v15, %v2796_v1  ;;  %v741_v21 = vmul.f32 0.2, %v656_v11  ;;  %vm709_vm2 = vcmp.ge.f32.partialorder %v656_v11, 0.0  ;;  %v772_v35 = vsel %vm708_vm3, %v654_v14, %v740_v24 }
 0x14d   : > { %v659_v20 = vpop.f32.mrf.mxu0  ;;  %1058 = vmatprep.mubr.bf16.mxu1 %v795_v16 }
 0x14e   : > { %vm710_vm1 = vcmp.ge.f32.partialorder %v658_v18, 0.0  ;;  %v742_v22 = vmul.f32 0.2, %v658_v18  ;;  %v660_v23 = vadd.f32 %v659_v20, %v2794_v0  ;;  %1059 = vmatmul.mubr.bf16.gmra.mxu1 %v794_v19  ;;  %v773_v30 = vsel %vm709_vm2, %v656_v11, %v741_v21 }
 0x14f   : > { %v663_v25 = vpop.f32.mrf.mxu0 }
 0x150   : > { %vm711_vm4 = vcmp.ge.f32.partialorder %v660_v23, 0.0  ;;  %v743_v26 = vmul.f32 0.2, %v660_v23  ;;  %v774_v28 = vsel %vm710_vm1, %v658_v18, %v742_v22  ;;  %v664_v32 = vadd.f32 %v663_v25, %v2796_v1 }
 0x151   : > { %v665_v27 = vpop.f32.mrf.mxu0  ;;  %v796_v37 = vpack.c.bf16 %v774_v28, %v772_v35  ;;  %vm1371_vm1 = vcmp.lt.s32.totalorder %v441_v59, 256 }
 0x152   : > { %v666_v29 = vadd.f32 %v665_v27, %v2794_v0  ;;  %v775_v31 = vsel %vm711_vm4, %v660_v23, %v743_v26  ;;  %v744_v42 = vmul.f32 0.2, %v664_v32  ;;  %vm712_vm7 = vcmp.ge.f32.partialorder %v664_v32, 0.0 }
 0x153   : > { %v667_v33 = vpop.f32.mrf.mxu0  ;;  %v797_v34 = vpack.c.bf16 %v775_v31, %v773_v30 }
 0x154   : > { %v668_v36 = vadd.f32 %v667_v33, %v2796_v1  ;;  %v745_v39 = vmul.f32 0.2, %v666_v29  ;;  %vm713_vm6 = vcmp.ge.f32.partialorder %v666_v29, 0.0  ;;  %v776_v53 = vsel %vm712_vm7, %v664_v32, %v744_v42 }
 0x155   : > { %v669_v38 = vpop.f32.mrf.mxu0  ;;  %1068 = vmatprep.mubr.bf16.mxu1 %v797_v34 }
 0x156   : > { %vm714_vm5 = vcmp.ge.f32.partialorder %v668_v36, 0.0  ;;  %v746_v40 = vmul.f32 0.2, %v668_v36  ;;  %v670_v41 = vadd.f32 %v669_v38, %v2794_v0  ;;  %1069 = vmatmul.mubr.bf16.gmra.mxu1 %v796_v37  ;;  %v777_v48 = vsel %vm713_vm6, %v666_v29, %v745_v39 }
 0x157   : > { %v673_v43 = vpop.f32.mrf.mxu0  ;;  %v2621_v37 = vmov 1966171168  }
 0x158   : > { %vm715_vm8 = vcmp.ge.f32.partialorder %v670_v41, 0.0  ;;  %v747_v44 = vmul.f32 0.2, %v670_v41  ;;  %v778_v46 = vsel %vm714_vm5, %v668_v36, %v746_v40  ;;  %v674_v50 = vadd.f32 %v673_v43, %v2796_v1 }
 0x159   : > { %v675_v45 = vpop.f32.mrf.mxu0  ;;  %v798_v55 = vpack.c.bf16 %v778_v46, %v776_v53  ;;  %v1354_v38 = vunpack.c.l.s4 %v2621_v37 }
 0x15a   : > { %v676_v47 = vadd.f32 %v675_v45, %v2794_v0  ;;  %v779_v49 = vsel %vm715_vm8, %v670_v41, %v747_v44  ;;  %v748_v62 = vmul.f32 0.2, %v674_v50  ;;  %vm716_vm11 = vcmp.ge.f32.partialorder %v674_v50, 0.0 }
 0x15b   : > { %v677_v51 = vpop.f32.mrf.mxu0  ;;  %v799_v52 = vpack.c.bf16 %v779_v49, %v777_v48 }
 0x15c   : > { %v678_v54 = vadd.f32 %v677_v51, %v2796_v1  ;;  %v749_v57 = vmul.f32 0.2, %v676_v47  ;;  %vm717_vm10 = vcmp.ge.f32.partialorder %v676_v47, 0.0  ;;  %v780_v11 = vsel %vm716_vm11, %v674_v50, %v748_v62 }
 0x15d   : > { %v679_v56 = vpop.f32.mrf.mxu0  ;;  %1078 = vmatprep.mubr.bf16.mxu1 %v799_v52  ;;  %v1355_v50 = vunpack.c.0.s8 %v1354_v38 }
 0x15e   : > { %vm718_vm9 = vcmp.ge.f32.partialorder %v678_v54, 0.0  ;;  %v750_v58 = vmul.f32 0.2, %v678_v54  ;;  %v680_v61 = vadd.f32 %v679_v56, %v2794_v0  ;;  %1079 = vmatmul.mubr.bf16.gmra.mxu1 %v798_v55  ;;  %v781_v6 = vsel %vm717_vm10, %v676_v47, %v749_v57 }
 0x15f   : > { %v683_v63 = vpop.f32.mrf.mxu0  ;;  %v1358_v62 = vsub.s32 %v1355_v50, %v2787_v60 }
 0x160   : > { %vm719_vm12 = vcmp.ge.f32.partialorder %v680_v61, 0.0  ;;  %v751_v2 = vmul.f32 0.2, %v680_v61  ;;  %v782_v4 = vsel %vm718_vm9, %v678_v54, %v750_v58  ;;  %v684_v8 = vadd.f32 %v683_v63, %v2796_v1 }
 0x161   : > { %v685_v3 = vpop.f32.mrf.mxu0  ;;  %v800_v13 = vpack.c.bf16 %v782_v4, %v780_v11 }
 0x162   : > { %v686_v5 = vadd.f32 %v685_v3, %v2794_v0  ;;  %v783_v7 = vsel %vm719_vm12, %v680_v61, %v751_v2  ;;  %v752_v18 = vmul.f32 0.2, %v684_v8  ;;  %vm720_vm15 = vcmp.ge.f32.partialorder %v684_v8, 0.0 }
 0x163   : > { %v687_v9 = vpop.f32.mrf.mxu0  ;;  %v801_v10 = vpack.c.bf16 %v783_v7, %v781_v6 }
 0x164   : > { %v688_v12 = vadd.f32 %v687_v9, %v2796_v1  ;;  %v753_v15 = vmul.f32 0.2, %v686_v5  ;;  %vm721_vm14 = vcmp.ge.f32.partialorder %v686_v5, 0.0  ;;  %v784_v24 = vsel %vm720_vm15, %v684_v8, %v752_v18  ;;  %v1307_v9 = vld [vmem:[#allocation3] sm:$0x3] }
 0x165   : > { %v689_v14 = vpop.f32.mrf.mxu0  ;;  %1088 = vmatprep.mubr.bf16.mxu1 %v801_v10 }
 0x166   : > { %vm722_vm13 = vcmp.ge.f32.partialorder %v688_v12, 0.0  ;;  %v754_v16 = vmul.f32 0.2, %v688_v12  ;;  %v690_v17 = vadd.f32 %v689_v14, %v2794_v0  ;;  %1089 = vmatmul.mubr.bf16.gmra.mxu1 %v800_v13  ;;  %v785_v21 = vsel %vm721_vm14, %v686_v5, %v753_v15 }
 0x168   : > { %vm723_vm0 = vcmp.ge.f32.partialorder %v690_v17, 0.0  ;;  %v755_v19 = vmul.f32 0.2, %v690_v17  ;;  %v786_v20 = vsel %vm722_vm13, %v688_v12, %v754_v16  ;;  %v1374_v16 = vld [vmem:[#allocation4] sm:$0x3] }
 0x169   : > { %v802_v1 = vpack.c.bf16 %v786_v20, %v784_v24 }
 0x16a   : > { %v787_v22 = vsel %vm723_vm0, %v690_v17, %v755_v19 }
 0x16b   : > { %v803_v23 = vpack.c.bf16 %v787_v22, %v785_v21 }
 0x16d   : > { %1098 = vmatprep.mubr.bf16.mxu1 %v803_v23 }
 0x16e   : > { %1099 = vmatmul.mubr.bf16.gmra.mxu1 %v802_v1 }
 0x1f6   : > { %v1030_v25 = vpop.f32.mrf.mxu0 }
 0x1f7   : > { %v1323_v26 = vrot.slane %v1030_v25, 4  ;;  %v1375_v27 = vmul.f32 %v1030_v25, %v1030_v25 }
 0x1f8   : > { %v1032_v28 = vpop.f32.mrf.mxu0 }
 0x1f9   : > { %v1324_v29 = vadd.f32 %v1323_v26, %v1030_v25  ;;  %v1422_v0 = vrot.slane %v1375_v27, 4  ;;  %v2214_v30 = vpack.c.bf16 %v1032_v28, %v1030_v25  ;;  %v1344_v31 = vrot.slane %v1032_v28, 4 }
 0x1fa   : > { %v1376_v32 = vmul.f32 %v1032_v28, %v1032_v28  ;;  %v1034_v33 = vpop.f32.mrf.mxu0 }
 0x1fb   : > { %v1325_v34 = vrot.slane %v1324_v29, 2  ;;  %v1423_v35 = vadd.f32 %v1422_v0, %v1375_v27  ;;  %1208 = vst [vmem:[#allocation2 + $0x30] sm:$0xff] %v2214_v30  ;;  %v1345_v36 = vadd.f32 %v1344_v31, %v1032_v28 }
 0x1fc   : > { %v1443_v39 = vrot.slane %v1376_v32, 4  ;;  %v1036_v40 = vpop.f32.mrf.mxu0 }
 0x1fd   : > { %v1326_v41 = vadd.f32 %v1325_v34, %v1324_v29  ;;  %v1424_v42 = vrot.slane %v1423_v35, 2  ;;  %v1346_v43 = vrot.slane %v1345_v36, 2  ;;  %v2215_v44 = vpack.c.bf16 %v1036_v40, %v1034_v33 }
 0x1fe   : > { %v1444_v45 = vadd.f32 %v1443_v39, %v1376_v32  ;;  %v1040_v46 = vpop.f32.mrf.mxu0 }
 0x1ff   : > { %v1327_v47 = vrot.slane %v1326_v41, 1  ;;  %v1425_v48 = vadd.f32 %v1424_v42, %v1423_v35  ;;  %v1347_v49 = vadd.f32 %v1346_v43, %v1345_v36  ;;  %1209 = vst [vmem:[#allocation2] sm:$0xff] %v2215_v44 }
 0x200   : > { %v1445_v51 = vrot.slane %v1444_v45, 2  ;;  %v1042_v52 = vpop.f32.mrf.mxu0 }
 0x201   : > { %v1348_v53 = vrot.slane %v1347_v49, 1  ;;  %v2216_v54 = vpack.c.bf16 %v1042_v52, %v1040_v46  ;;  %v1426_v55 = vrot.slane %v1425_v48, 1  ;;  %v1328_v58 = vadd.f32 %v1327_v47, %v1326_v41 }
 0x202   : > { %v1446_v56 = vadd.f32 %v1445_v51, %v1444_v45  ;;  %v1044_v57 = vpop.f32.mrf.mxu0 }
 0x203   : > { %v1349_v61 = vadd.f32 %v1348_v53, %v1347_v49  ;;  %1210 = vst [vmem:[#allocation2 + $0x58] sm:$0xff] %v2216_v54  ;;  %v1427_v5 = vadd.f32 %v1426_v55, %v1425_v48 }
 0x204   : > { %v1447_v63 = vrot.slane %v1446_v56, 1  ;;  %v1046_v2 = vpop.f32.mrf.mxu0 }
 0x205   : > { %v1352_v3 = vcombine.low %v1328_v58, %v1349_v61  ;;  %v2217_v4 = vpack.c.bf16 %v1046_v2, %v1044_v57 }
 0x206   : > { %v1448_v6 = vadd.f32 %v1447_v63, %v1446_v56  ;;  %v1050_v7 = vpop.f32.mrf.mxu1 }
 0x207   : > { %v1359_v8 = vrot.slane %v1352_v3, %v1358_v62  ;;  %1211 = vst [vmem:[#allocation2 + $0x18] sm:$0xff] %v2217_v4 }
 0x208   : > { %v1451_v10 = vcombine.low %v1427_v5, %v1448_v6  ;;  %v1052_v11 = vpop.f32.mrf.mxu1 }
 0x209   : > { %v1366_v12 = vrot.slane %v1359_v8, %v1358_v62  ;;  %v2218_v13 = vpack.c.bf16 %v1052_v11, %v1050_v7 }
 0x20a   : > { %v1458_v14 = vrot.slane %v1451_v10, %v1358_v62  ;;  %v1054_v15 = vpop.f32.mrf.mxu1 }
 0x20b   : > { %v1368_v60 = vadd.f32 %v1366_v12, %v1307_v9  ;;  %1212 = vst [vmem:[#allocation2 + $0x50] sm:$0xff] %v2218_v13 }
 0x20c   : > { %v1465_v17 = vrot.slane %v1458_v14, %v1358_v62  ;;  %v1056_v18 = vpop.f32.mrf.mxu1 }
 0x20d   : > { %1373 = vst.msk [vmem:[#allocation3] sm:$0x3] %vm1371_vm1, %v1368_v60  ;;  %v2219_v19 = vpack.c.bf16 %v1056_v18, %v1054_v15 }
 0x20e   : > { %v1467_v20 = vadd.f32 %v1465_v17, %v1374_v16  ;;  %v1060_v21 = vpop.f32.mrf.mxu1 }
 0x20f   : > { %1213 = vst [vmem:[#allocation2 + $0x68] sm:$0xff] %v2219_v19 }
 0x210   : > { %1468 = vst.msk [vmem:[#allocation4] sm:$0x3] %vm1371_vm1, %v1467_v20  ;;  %v1062_v22 = vpop.f32.mrf.mxu1 }
 0x211   : > { %v2220_v23 = vpack.c.bf16 %v1062_v22, %v1060_v21 }
 0x212   : > { %v1064_v24 = vpop.f32.mrf.mxu1 }
 0x213   : > { %1214 = vst [vmem:[#allocation2 + $0x8] sm:$0xff] %v2220_v23 }
 0x214   : > { %v1066_v1 = vpop.f32.mrf.mxu1 }
 0x215   : > { %v2221_v25 = vpack.c.bf16 %v1066_v1, %v1064_v24 }
 0x216   : > { %v1070_v59 = vpop.f32.mrf.mxu1 }
 0x217   : > { %1215 = vst [vmem:[#allocation2 + $0x48] sm:$0xff] %v2221_v25 }
 0x218   : > { %v1072_v26 = vpop.f32.mrf.mxu1 }
 0x219   : > { %v2222_v27 = vpack.c.bf16 %v1072_v26, %v1070_v59 }
 0x21a   : > { %v1074_v28 = vpop.f32.mrf.mxu1 }
 0x21b   : > { %1216 = vst [vmem:[#allocation2 + $0x40] sm:$0xff] %v2222_v27 }
 0x21c   : > { %v1076_v29 = vpop.f32.mrf.mxu1 }
 0x21d   : > { %v2223_v0 = vpack.c.bf16 %v1076_v29, %v1074_v28 }
 0x21e   : > { %v1080_v30 = vpop.f32.mrf.mxu1 }
 0x21f   : > { %1217 = vst [vmem:[#allocation2 + $0x20] sm:$0xff] %v2223_v0 }
 0x220   : > { %v1082_v31 = vpop.f32.mrf.mxu1 }
 0x221   : > { %v2224_v32 = vpack.c.bf16 %v1082_v31, %v1080_v30 }
 0x222   : > { %v1084_v33 = vpop.f32.mrf.mxu1 }
 0x223   : > { %1218 = vst [vmem:[#allocation2 + $0x10] sm:$0xff] %v2224_v32 }
 0x224   : > { %v1086_v34 = vpop.f32.mrf.mxu1 }
 0x225   : > { %v2225_v35 = vpack.c.bf16 %v1086_v34, %v1084_v33 }
 0x226   : > { %v1090_v36 = vpop.f32.mrf.mxu1 }
 0x227   : > { %1219 = vst [vmem:[#allocation2 + $0x38] sm:$0xff] %v2225_v35 }
 0x228   : > { %v1092_v37 = vpop.f32.mrf.mxu1 }
 0x229   : > { %v2226_v38 = vpack.c.bf16 %v1092_v37, %v1090_v36 }
 0x22a   : > { %v1094_v39 = vpop.f32.mrf.mxu1 }
 0x22b   : > { %1220 = vst [vmem:[#allocation2 + $0x60] sm:$0xff] %v2226_v38 }
 0x22c   : > { %v1096_v40 = vpop.f32.mrf.mxu1 }
 0x22d   : > { %v2227_v41 = vpack.c.bf16 %v1096_v40, %v1094_v39 }
 0x22e   : > { %v1100_v42 = vpop.f32.mrf.mxu1 }
 0x22f   : > { %1221 = vst [vmem:[#allocation2 + $0x70] sm:$0xff] %v2227_v41 }
 0x230   : > { %v1102_v43 = vpop.f32.mrf.mxu1 }
 0x231   : > { %v2228_v44 = vpack.c.bf16 %v1102_v43, %v1100_v42 }
 0x232   : > { %v1104_v45 = vpop.f32.mrf.mxu1 }
 0x233   : > { %1222 = vst [vmem:[#allocation2 + $0x78] sm:$0xff] %v2228_v44 }
 0x234   : > { %v1106_v46 = vpop.f32.mrf.mxu1 }
 0x235   : > { %v2229_v47 = vpack.c.bf16 %v1106_v46, %v1104_v45 }
 0x237   : > { %1223 = vst [vmem:[#allocation2 + $0x28] sm:$0xff] %v2229_v47 }
 0x238 PF: > { %p2193_p3 = scmp.ne.s32.totalorder %s2602_s27, 1 }
 0x23a   : > { %1472 = sbr.rel (%p2193_p3) target bundleno = 943 (0x3af), region = 76 }
 0x23f   : > { %v2484_v48 = vld [vmem:[#allocation9 + $0x78] sm:$0xff]   ;;  %v2486_v50 = vld [vmem:[#allocation9 + $0x70] sm:$0xff]   ;;  %v2488_v52 = vld [vmem:[#allocation9 + $0x68] sm:$0xff]   ;;  %v1538_v10 = vlaneseq }
 0x240   : > { %v2485_v49 = vld [vmem:[#allocation9 + $0x38] sm:$0xff]   ;;  %2230 = vmatprep.subr.bf16.mxu0 %v2484_v48  ;;  %2326 = vmatprep.subr.bf16.mxu1 %v2484_v48  ;;  %v2487_v51 = vld [vmem:[#allocation9 + $0x30] sm:$0xff]   ;;  %v2489_v53 = vld [vmem:[#allocation9 + $0x28] sm:$0xff]  }
 0x241   : > { %2231 = vmatpush3.bf16.msra.mxu0 %v2485_v49  ;;  %2334 = vmatpush3.bf16.msra.mxu1 %v2485_v49  ;;  %v2490_v54 = vld [vmem:[#allocation9 + $0x60] sm:$0xff]   ;;  %v2492_v56 = vld [vmem:[#allocation9 + $0x58] sm:$0xff]   ;;  %v2494_v58 = vld [vmem:[#allocation9 + $0x50] sm:$0xff]   ;;  %v2837_v12 = vshrl.u32 %v1538_v10, 7 }
 0x242   : > { %2232 = vmatprep.subr.bf16.mxu0 %v2486_v50  ;;  %2327 = vmatprep.subr.bf16.mxu1 %v2486_v50  ;;  %v2491_v55 = vld [vmem:[#allocation9 + $0x20] sm:$0xff]   ;;  %v2493_v57 = vld [vmem:[#allocation9 + $0x18] sm:$0xff]   ;;  %v2495_v3 = vld [vmem:[#allocation9 + $0x10] sm:$0xff]  }
 0x243   : > { %v1473_v61 = vld [vmem:[#allocation3] sm:$0x3]  ;;  %v1475_v62 = vld [vmem:[#allocation4] sm:$0x3]  ;;  %v2496_v5 = vld [vmem:[#allocation9 + $0x48] sm:$0xff]   ;;  %v1544_v16 = vsub.s32 1, %v2837_v12 }
 0x244   : > { %v2833_v63 = vmul.f32 0.125, %v1473_v61  ;;  %v1476_v2 = vmul.f32 0.125, %v1475_v62  ;;  %v2497_v7 = vld [vmem:[#allocation9 + $0x8] sm:$0xff]   ;;  %v2498_v9 = vld [vmem:[#allocation9 + $0x40] sm:$0xff]   ;;  %v1491_v15 = vld [vmem:[#allocation2 + $0x58] sm:$0xff]  ;;  %v1540_v22 = vsub.s32 0, %v2837_v12 }
 0x245   : > { %2233 = vmatpush3.bf16.msra.mxu0 %v2487_v51  ;;  %2335 = vmatpush3.bf16.msra.mxu1 %v2487_v51  ;;  %v2499_v11 = vld [vmem:[#allocation9] sm:$0xff]   ;;  %v1489_v13 = vld [vmem:[#allocation2 + $0x30] sm:$0xff]  ;;  %v2839_v60 = vld [vmem:[#allocation2 + $0x18] sm:$0xff]  ;;  %v1510_v25 = vunpack.c.h.bf16 %v1491_v15  ;;  %v1509_v26 = vunpack.c.l.bf16 %v1491_v15 }
 0x246   : > { %2234 = vmatprep.subr.bf16.mxu0 %v2488_v52  ;;  %2328 = vmatprep.subr.bf16.mxu1 %v2488_v52  ;;  %v1477_v4 = vmul.f32 %v2833_v63, %v2833_v63  ;;  %v1490_v14 = vld [vmem:[#allocation2] sm:$0xff]  ;;  %v2842_v17 = vld [vmem:[#allocation2 + $0x50] sm:$0xff]  ;;  %v2844_v18 = vld [vmem:[#allocation2 + $0x68] sm:$0xff]  ;;  %v1505_v19 = vunpack.c.l.bf16 %v1489_v13  ;;  %v1506_v20 = vunpack.c.h.bf16 %v1489_v13  ;;  %v1512_v59 = vunpack.c.h.bf16 %v2839_v60 }
 0x247   : > { %v1507_v21 = vunpack.c.l.bf16 %v1490_v14  ;;  %v2847_v23 = vld [vmem:[#allocation2 + $0x8] sm:$0xff]  ;;  %v1508_v1 = vunpack.c.h.bf16 %v1490_v14  ;;  %v2852_v27 = vld [vmem:[#allocation2 + $0x40] sm:$0xff]  ;;  %v1511_v0 = vunpack.c.l.bf16 %v2839_v60  ;;  %v1514_v30 = vunpack.c.h.bf16 %v2842_v17  ;;  %v2863_v33 = vld [vmem:[#allocation2 + $0x10] sm:$0xff] }
 0x248   : > { %v1478_v6 = vsub.f32 %v1476_v2, %v1477_v4  ;;  %v2849_v24 = vld [vmem:[#allocation2 + $0x48] sm:$0xff]  ;;  %v2854_v28 = vld [vmem:[#allocation2 + $0x20] sm:$0xff]  ;;  %v1516_v31 = vunpack.c.h.bf16 %v2844_v18  ;;  %v1513_v32 = vunpack.c.l.bf16 %v2842_v17  ;;  %v2865_v34 = vld [vmem:[#allocation2 + $0x38] sm:$0xff]  ;;  %v1515_v35 = vunpack.c.l.bf16 %v2844_v18 }
 0x249   : > { %2235 = vmatpush3.bf16.msra.mxu0 %v2489_v53  ;;  %2336 = vmatpush3.bf16.msra.mxu1 %v2489_v53  ;;  %v1479_v29 = vld [vmem:[%s3043_s4] sm:$0x3]  ;;  %v1518_v36 = vunpack.c.h.bf16 %v2847_v23  ;;  %v1520_v37 = vunpack.c.h.bf16 %v2849_v24  ;;  %v1517_v38 = vunpack.c.l.bf16 %v2847_v23  ;;  %v2873_v40 = vld [vmem:[#allocation2 + $0x70] sm:$0xff]  ;;  %v1519_v42 = vunpack.c.l.bf16 %v2849_v24  ;;  %v2882_v50 = vld [vmem:[#allocation2 + $0x78] sm:$0xff] }
 0x24a   : > { %2236 = vmatprep.subr.bf16.mxu0 %v2490_v54  ;;  %2329 = vmatprep.subr.bf16.mxu1 %v2490_v54  ;;  %v1480_v8 = vadd.f32 1e-05, %v1478_v6  ;;  %v2871_v39 = vld [vmem:[#allocation2 + $0x60] sm:$0xff]  ;;  %v1521_v43 = vunpack.c.l.bf16 %v2852_v27  ;;  %v1522_v44 = vunpack.c.h.bf16 %v2852_v27  ;;  %v1523_v45 = vunpack.c.l.bf16 %v2854_v28  ;;  %v2884_v51 = vld [vmem:[#allocation2 + $0x28] sm:$0xff] }
 0x24b   : > { %v1524_v47 = vunpack.c.h.bf16 %v2854_v28  ;;  %v1526_v48 = vunpack.c.h.bf16 %v2863_v33  ;;  %v1528_v49 = vunpack.c.h.bf16 %v2865_v34  ;;  %v1483_v52 = vld [vmem:[%s3044_s5] sm:$0x3]  ;;  %v1525_v53 = vunpack.c.l.bf16 %v2863_v33 }
 0x24c   : > { %2500 = vrsqrt.f32 %v1480_v8  ;;  %v1527_v54 = vunpack.c.l.bf16 %v2865_v34  ;;  %v1529_v62 = vunpack.c.l.bf16 %v2871_v39  ;;  %v1531_v2 = vunpack.c.l.bf16 %v2873_v40 }
 0x24d   : > { %2237 = vmatpush3.bf16.msra.mxu0 %v2491_v55  ;;  %2337 = vmatpush3.bf16.msra.mxu1 %v2491_v55  ;;  %v1530_v55 = vunpack.c.h.bf16 %v2871_v39  ;;  %v1536_v4 = vunpack.c.h.bf16 %v2884_v51 }
 0x24e   : > { %2238 = vmatprep.subr.bf16.mxu0 %v2492_v56  ;;  %2330 = vmatprep.subr.bf16.mxu1 %v2492_v56  ;;  %v1532_v56 = vunpack.c.h.bf16 %v2873_v40 }
 0x251   : > { %2239 = vmatpush3.bf16.msra.mxu0 %v2493_v57  ;;  %2338 = vmatpush3.bf16.msra.mxu1 %v2493_v57 }
 0x252   : > { %2240 = vmatprep.subr.bf16.mxu0 %v2494_v58  ;;  %2331 = vmatprep.subr.bf16.mxu1 %v2494_v58 }
 0x255   : > { %2241 = vmatpush3.bf16.msra.mxu0 %v2495_v3  ;;  %2339 = vmatpush3.bf16.msra.mxu1 %v2495_v3  ;;  %v1534_v3 = vunpack.c.h.bf16 %v2882_v50 }
 0x256   : > { %2242 = vmatprep.subr.bf16.mxu0 %v2496_v5  ;;  %2332 = vmatprep.subr.bf16.mxu1 %v2496_v5  ;;  %v1533_v5 = vunpack.c.l.bf16 %v2882_v50 }
 0x259   : > { %2243 = vmatpush3.bf16.msra.mxu0 %v2497_v7  ;;  %2340 = vmatpush3.bf16.msra.mxu1 %v2497_v7  ;;  %v2501_v41 = vpop.eup %2500 }
 0x25a   : > { %2244 = vmatprep.subr.bf16.mxu0 %v2498_v9  ;;  %2333 = vmatprep.subr.bf16.mxu1 %v2498_v9  ;;  %v1482_v46 = vmul.f32 %v2501_v41, %v1479_v29 }
 0x25c   : > { %v1484_v57 = vmul.f32 %v1482_v46, %v2833_v63  ;;  %v2894_v58 = vrot.slane %v1482_v46, %v1544_v16  ;;  %v2896_v61 = vrot.slane %v1482_v46, %v1540_v22 }
 0x25d   : > { %2245 = vmatpush3.bf16.msra.mxu0 %v2499_v11  ;;  %2341 = vmatpush3.bf16.msra.mxu1 %v2499_v11 }
 0x25e   : > { %v1485_v6 = vsub.f32 %v1483_v52, %v1484_v57  ;;  %v1549_v7 = vmul.f32 %v2894_v58, %v1506_v20  ;;  %v1551_v8 = vmul.f32 %v2894_v58, %v1508_v1  ;;  %v1548_v63 = vmul.f32 %v2896_v61, %v1505_v19 }
 0x25f   : > { %v1550_v9 = vmul.f32 %v2896_v61, %v1507_v21  ;;  %v1553_v10 = vmul.f32 %v2894_v58, %v1510_v25  ;;  %v1555_v11 = vmul.f32 %v2894_v58, %v1512_v59  ;;  %v1552_v12 = vmul.f32 %v2896_v61, %v1509_v26 }
 0x260   : > { %v2910_v13 = vrot.slane %v1485_v6, %v1544_v16  ;;  %v2912_v14 = vrot.slane %v1485_v6, %v1540_v22  ;;  %v1554_v15 = vmul.f32 %v2896_v61, %v1511_v0  ;;  %v1557_v60 = vmul.f32 %v2894_v58, %v1514_v30 }
 0x261   : > { %v1559_v17 = vmul.f32 %v2894_v58, %v1516_v31  ;;  %v1556_v18 = vmul.f32 %v2896_v61, %v1513_v32  ;;  %v1558_v19 = vmul.f32 %v2896_v61, %v1515_v35  ;;  %v1561_v20 = vmul.f32 %v2894_v58, %v1518_v36 }
 0x262   : > { %v1592_v21 = vadd.f32 %v2910_v13, %v1549_v7  ;;  %v1594_v1 = vadd.f32 %v2910_v13, %v1551_v8  ;;  %v1591_v16 = vadd.f32 %v2912_v14, %v1548_v63  ;;  %v1593_v22 = vadd.f32 %v2912_v14, %v1550_v9 }
 0x263   : > { %v1596_v25 = vadd.f32 %v2910_v13, %v1553_v10  ;;  %v1598_v59 = vadd.f32 %v2910_v13, %v1555_v11  ;;  %v1595_v26 = vadd.f32 %v2912_v14, %v1552_v12  ;;  %v1597_v29 = vadd.f32 %v2912_v14, %v1554_v15 }
 0x264   : > { %vm1624_vm2 = vcmp.ge.f32.partialorder %v1592_v21, 0.0  ;;  %vm1626_vm3 = vcmp.ge.f32.partialorder %v1594_v1, 0.0  ;;  %v1656_v0 = vmul.f32 0.2, %v1592_v21  ;;  %v1658_v30 = vmul.f32 0.2, %v1594_v1 }
 0x265   : > { %vm1623_vm4 = vcmp.ge.f32.partialorder %v1591_v16, 0.0  ;;  %vm1625_vm5 = vcmp.ge.f32.partialorder %v1593_v22, 0.0  ;;  %v1655_v31 = vmul.f32 0.2, %v1591_v16  ;;  %v1657_v32 = vmul.f32 0.2, %v1593_v22 }
 0x266   : > { %v1688_v35 = vsel %vm1624_vm2, %v1592_v21, %v1656_v0  ;;  %v1690_v36 = vsel %vm1626_vm3, %v1594_v1, %v1658_v30  ;;  %vm1628_vm6 = vcmp.ge.f32.partialorder %v1596_v25, 0.0  ;;  %vm1630_vm7 = vcmp.ge.f32.partialorder %v1598_v59, 0.0 }
 0x267   : > { %v1720_v41 = vpack.c.bf16 %v1690_v36, %v1688_v35  ;;  %v1687_v46 = vsel %vm1623_vm4, %v1591_v16, %v1655_v31  ;;  %v1689_v52 = vsel %vm1625_vm5, %v1593_v22, %v1657_v32  ;;  %v1660_v57 = vmul.f32 0.2, %v1596_v25 }
 0x268   : > { %v1719_v6 = vpack.c.bf16 %v1689_v52, %v1687_v46  ;;  %v1662_v7 = vmul.f32 0.2, %v1598_v59  ;;  %vm1627_vm8 = vcmp.ge.f32.partialorder %v1595_v26, 0.0  ;;  %vm1629_vm9 = vcmp.ge.f32.partialorder %v1597_v29, 0.0 }
 0x269   : > { %1902 = vmatprep.mubr.bf16.mxu0 %v1720_v41  ;;  %v1692_v8 = vsel %vm1628_vm6, %v1596_v25, %v1660_v57  ;;  %v1659_v63 = vmul.f32 0.2, %v1595_v26  ;;  %v1661_v9 = vmul.f32 0.2, %v1597_v29  ;;  %v1600_v10 = vadd.f32 %v2910_v13, %v1557_v60 }
 0x26a   : > { %1903 = vmatmul.mubr.bf16.vlgmr.msra.gmra.mxu0 %v1719_v6  ;;  %v1694_v11 = vsel %vm1630_vm7, %v1598_v59, %v1662_v7  ;;  %v1602_v12 = vadd.f32 %v2910_v13, %v1559_v17  ;;  %v1599_v15 = vadd.f32 %v2912_v14, %v1556_v18  ;;  %v1601_v21 = vadd.f32 %v2912_v14, %v1558_v19 }
 0x26b   : > { %v1722_v1 = vpack.c.bf16 %v1694_v11, %v1692_v8  ;;  %v1691_v16 = vsel %vm1627_vm8, %v1595_v26, %v1659_v63  ;;  %v1693_v22 = vsel %vm1629_vm9, %v1597_v29, %v1661_v9  ;;  %vm1632_vm10 = vcmp.ge.f32.partialorder %v1600_v10, 0.0 }
 0x26c   : > { %v1721_v0 = vpack.c.bf16 %v1693_v22, %v1691_v16  ;;  %vm1634_vm11 = vcmp.ge.f32.partialorder %v1602_v12, 0.0  ;;  %v1664_v30 = vmul.f32 0.2, %v1600_v10  ;;  %v1666_v25 = vmul.f32 0.2, %v1602_v12 }
 0x26d   : > { %1910 = vmatprep.mubr.bf16.mxu0 %v1722_v1  ;;  %vm1631_vm12 = vcmp.ge.f32.partialorder %v1599_v15, 0.0  ;;  %vm1633_vm13 = vcmp.ge.f32.partialorder %v1601_v21, 0.0  ;;  %v1663_v60 = vmul.f32 0.2, %v1599_v15  ;;  %v1665_v31 = vmul.f32 0.2, %v1601_v21 }
 0x26e   : > { %v1696_v59 = vsel %vm1632_vm10, %v1600_v10, %v1664_v30  ;;  %v1698_v32 = vsel %vm1634_vm11, %v1602_v12, %v1666_v25  ;;  %v1563_v17 = vmul.f32 %v2894_v58, %v1520_v37  ;;  %v1604_v18 = vadd.f32 %v2910_v13, %v1561_v20 }
 0x26f   : > { %v1724_v19 = vpack.c.bf16 %v1698_v32, %v1696_v59  ;;  %v1695_v26 = vsel %vm1631_vm12, %v1599_v15, %v1663_v60  ;;  %v1697_v29 = vsel %vm1633_vm13, %v1601_v21, %v1665_v31  ;;  %v1560_v35 = vmul.f32 %v2896_v61, %v1517_v38 }
 0x270   : > { %v1723_v36 = vpack.c.bf16 %v1697_v29, %v1695_v26  ;;  %v1606_v41 = vadd.f32 %v2910_v13, %v1563_v17  ;;  %vm1636_vm14 = vcmp.ge.f32.partialorder %v1604_v18, 0.0  ;;  %v1668_v46 = vmul.f32 0.2, %v1604_v18 }
 0x271   : > { %v1562_v52 = vmul.f32 %v2896_v61, %v1519_v42  ;;  %v1603_v37 = vadd.f32 %v2912_v14, %v1560_v35  ;;  %v1565_v20 = vmul.f32 %v2894_v58, %v1522_v44  ;;  %v1567_v23 = vmul.f32 %v2894_v58, %v1524_v47 }
 0x272   : > { %1911 = vmatmul.mubr.bf16.gmra.mxu0 %v1721_v0  ;;  %vm1638_vm15 = vcmp.ge.f32.partialorder %v1606_v41, 0.0  ;;  %v1670_v38 = vmul.f32 0.2, %v1606_v41  ;;  %v1700_v57 = vsel %vm1636_vm14, %v1604_v18, %v1668_v46  ;;  %v1564_v24 = vmul.f32 %v2896_v61, %v1521_v43 }
 0x273   : > { %1918 = vmatprep.mubr.bf16.mxu0 %v1724_v19  ;;  %v1605_v42 = vadd.f32 %v2912_v14, %v1562_v52  ;;  %vm1635_vm0 = vcmp.ge.f32.partialorder %v1603_v37, 0.0  ;;  %v1667_v6 = vmul.f32 0.2, %v1603_v37  ;;  %v1608_v7 = vadd.f32 %v2910_v13, %v1565_v20 }
 0x274   : > { %v1702_v44 = vsel %vm1638_vm15, %v1606_v41, %v1670_v38  ;;  %v1610_v8 = vadd.f32 %v2910_v13, %v1567_v23  ;;  %v1566_v47 = vmul.f32 %v2896_v61, %v1523_v45  ;;  %v1607_v63 = vadd.f32 %v2912_v14, %v1564_v24 }
 0x275   : > { %v1726_v9 = vpack.c.bf16 %v1702_v44, %v1700_v57  ;;  %vm1637_vm1 = vcmp.ge.f32.partialorder %v1605_v42, 0.0  ;;  %v1669_v27 = vmul.f32 0.2, %v1605_v42  ;;  %v1699_v43 = vsel %vm1635_vm0, %v1603_v37, %v1667_v6 }
 0x276   : > { %vm1640_vm2 = vcmp.ge.f32.partialorder %v1608_v7, 0.0  ;;  %vm1642_vm3 = vcmp.ge.f32.partialorder %v1610_v8, 0.0  ;;  %v1672_v10 = vmul.f32 0.2, %v1608_v7  ;;  %v1674_v11 = vmul.f32 0.2, %v1610_v8 }
 0x277   : > { %v1701_v12 = vsel %vm1637_vm1, %v1605_v42, %v1669_v27  ;;  %v1609_v15 = vadd.f32 %v2912_v14, %v1566_v47  ;;  %vm1639_vm4 = vcmp.ge.f32.partialorder %v1607_v63, 0.0  ;;  %v1671_v21 = vmul.f32 0.2, %v1607_v63 }
 0x278   : > { %v1725_v1 = vpack.c.bf16 %v1701_v12, %v1699_v43  ;;  %v1704_v16 = vsel %vm1640_vm2, %v1608_v7, %v1672_v10  ;;  %v1706_v28 = vsel %vm1642_vm3, %v1610_v8, %v1674_v11  ;;  %v1569_v45 = vmul.f32 %v2894_v58, %v1526_v48 }
 0x279   : > { %v1728_v22 = vpack.c.bf16 %v1706_v28, %v1704_v16  ;;  %vm1641_vm5 = vcmp.ge.f32.partialorder %v1609_v15, 0.0  ;;  %v1673_v0 = vmul.f32 0.2, %v1609_v15  ;;  %v1703_v30 = vsel %vm1639_vm4, %v1607_v63, %v1671_v21 }
 0x27a   : > { %1919 = vmatmul.mubr.bf16.gmra.mxu0 %v1723_v36  ;;  %v1571_v25 = vmul.f32 %v2894_v58, %v1528_v49  ;;  %v1612_v60 = vadd.f32 %v2910_v13, %v1569_v45  ;;  %v1568_v31 = vmul.f32 %v2896_v61, %v1525_v53  ;;  %v1570_v59 = vmul.f32 %v2896_v61, %v1527_v54 }
 0x27b   : > { %1926 = vmatprep.mubr.bf16.mxu0 %v1726_v9  ;;  %1934 = vmatprep.mubr.bf16.mxu1 %v1728_v22  ;;  %v1705_v48 = vsel %vm1641_vm5, %v1609_v15, %v1673_v0  ;;  %v1573_v32 = vmul.f32 %v2894_v58, %v1530_v55  ;;  %v1575_v49 = vmul.f32 %v2894_v58, %v1532_v56  ;;  %v1535_v17 = vunpack.c.l.bf16 %v2884_v51 }
 0x27c   : > { %v1727_v33 = vpack.c.bf16 %v1705_v48, %v1703_v30  ;;  %v1614_v53 = vadd.f32 %v2910_v13, %v1571_v25  ;;  %vm1644_vm6 = vcmp.ge.f32.partialorder %v1612_v60, 0.0  ;;  %v1676_v34 = vmul.f32 0.2, %v1612_v60 }
 0x27d   : > { %v1611_v54 = vadd.f32 %v2912_v14, %v1568_v31  ;;  %v1613_v18 = vadd.f32 %v2912_v14, %v1570_v59  ;;  %v1616_v19 = vadd.f32 %v2910_v13, %v1573_v32  ;;  %v1618_v26 = vadd.f32 %v2910_v13, %v1575_v49 }
 0x27e   : > { %1935 = vmatmul.mubr.bf16.vlgmr.msra.gmra.mxu1 %v1727_v33  ;;  %vm1646_vm7 = vcmp.ge.f32.partialorder %v1614_v53, 0.0  ;;  %v1678_v55 = vmul.f32 0.2, %v1614_v53  ;;  %v1708_v29 = vsel %vm1644_vm6, %v1612_v60, %v1676_v34  ;;  %v1572_v56 = vmul.f32 %v2896_v61, %v1529_v62 }
 0x27f   : > { %vm1643_vm8 = vcmp.ge.f32.partialorder %v1611_v54, 0.0  ;;  %vm1645_vm9 = vcmp.ge.f32.partialorder %v1613_v18, 0.0  ;;  %v1675_v35 = vmul.f32 0.2, %v1611_v54  ;;  %v1677_v36 = vmul.f32 0.2, %v1613_v18 }
 0x280   : > { %v1710_v41 = vsel %vm1646_vm7, %v1614_v53, %v1678_v55  ;;  %vm1648_vm10 = vcmp.ge.f32.partialorder %v1616_v19, 0.0  ;;  %vm1650_vm11 = vcmp.ge.f32.partialorder %v1618_v26, 0.0  ;;  %v1680_v46 = vmul.f32 0.2, %v1616_v19 }
 0x281   : > { %v1730_v52 = vpack.c.bf16 %v1710_v41, %v1708_v29  ;;  %v1707_v37 = vsel %vm1643_vm8, %v1611_v54, %v1675_v35  ;;  %v1709_v20 = vsel %vm1645_vm9, %v1613_v18, %v1677_v36  ;;  %v1682_v23 = vmul.f32 0.2, %v1618_v26 }
 0x282   : > { %1927 = vmatmul.mubr.bf16.gmra.mxu0 %v1725_v1  ;;  %v1729_v38 = vpack.c.bf16 %v1709_v20, %v1707_v37  ;;  %v1712_v57 = vsel %vm1648_vm10, %v1616_v19, %v1680_v46  ;;  %v1574_v39 = vmul.f32 %v2896_v61, %v1531_v2  ;;  %v1615_v62 = vadd.f32 %v2912_v14, %v1572_v56 }
 0x283   : > { %1942 = vmatprep.mubr.bf16.mxu1 %v1730_v52  ;;  %v1714_v24 = vsel %vm1650_vm11, %v1618_v26, %v1682_v23  ;;  %v1577_v42 = vmul.f32 %v2894_v58, %v1534_v3  ;;  %v1579_v6 = vmul.f32 %v2894_v58, %v1536_v4  ;;  %v1576_v7 = vmul.f32 %v2896_v61, %v1533_v5 }
 0x284   : > { %v1732_v44 = vpack.c.bf16 %v1714_v24, %v1712_v57  ;;  %v1617_v40 = vadd.f32 %v2912_v14, %v1574_v39  ;;  %vm1647_vm12 = vcmp.ge.f32.partialorder %v1615_v62, 0.0  ;;  %v1679_v2 = vmul.f32 0.2, %v1615_v62 }
 0x285   : > { %v1620_v8 = vadd.f32 %v2910_v13, %v1577_v42  ;;  %v1622_v47 = vadd.f32 %v2910_v13, %v1579_v6  ;;  %v1578_v63 = vmul.f32 %v2896_v61, %v1535_v17  ;;  %v1619_v58 = vadd.f32 %v2912_v14, %v1576_v7 }
 0x286   : > { %1943 = vmatmul.mubr.bf16.gmra.mxu1 %v1729_v38  ;;  %vm1649_vm13 = vcmp.ge.f32.partialorder %v1617_v40, 0.0  ;;  %v1681_v51 = vmul.f32 0.2, %v1617_v40  ;;  %v1711_v3 = vsel %vm1647_vm12, %v1615_v62, %v1679_v2 }
 0x287   : > { %1950 = vmatprep.mubr.bf16.mxu1 %v1732_v44  ;;  %vm1652_vm14 = vcmp.ge.f32.partialorder %v1620_v8, 0.0  ;;  %vm1654_vm15 = vcmp.ge.f32.partialorder %v1622_v47, 0.0  ;;  %v1684_v50 = vmul.f32 0.2, %v1620_v8  ;;  %v1686_v4 = vmul.f32 0.2, %v1622_v47 }
 0x288   : > { %v1713_v5 = vsel %vm1649_vm13, %v1617_v40, %v1681_v51  ;;  %v1621_v9 = vadd.f32 %v2912_v14, %v1578_v63  ;;  %v1683_v11 = vmul.f32 0.2, %v1619_v58  ;;  %vm1651_vm0 = vcmp.ge.f32.partialorder %v1619_v58, 0.0  ;;  %v3011_v14 = vld [vmem:[%s3046_s7] ss:$0 sm:$0xff] }
 0x289   : > { %v1716_v27 = vsel %vm1652_vm14, %v1620_v8, %v1684_v50  ;;  %v1718_v43 = vsel %vm1654_vm15, %v1622_v47, %v1686_v4  ;;  %v1731_v10 = vpack.c.bf16 %v1713_v5, %v1711_v3 }
 0x28a   : > { %v1734_v13 = vpack.c.bf16 %v1718_v43, %v1716_v27  ;;  %v1685_v61 = vmul.f32 0.2, %v1621_v9  ;;  %vm1653_vm1 = vcmp.ge.f32.partialorder %v1621_v9, 0.0  ;;  %v1715_v12 = vsel %vm1651_vm0, %v1619_v58, %v1683_v11 }
 0x28c   : > { %v1717_v15 = vsel %vm1653_vm1, %v1621_v9, %v1685_v61 }
 0x28d   : > { %v1733_v21 = vpack.c.bf16 %v1717_v15, %v1715_v12 }
 0x28e   : > { %1951 = vmatmul.mubr.bf16.gmra.mxu1 %v1731_v10 }
 0x28f   : > { %1958 = vmatprep.mubr.bf16.mxu1 %v1734_v13 }
 0x296   : > { %1959 = vmatmul.mubr.bf16.gmra.mxu1 %v1733_v21 }
 0x32a   : > { %v2246_v1 = vpop.f32.mrf.mxu0 }
 0x32c   : > { %v2247_v16 = vpop.f32.mrf.mxu0 }
 0x32d   : > { %v2248_v28 = vadd.f32 %v2247_v16, %v2246_v1 }
 0x32e   : > { %v2249_v45 = vpop.f32.mrf.mxu0 }
 0x32f   : > { %v1905_v22 = vadd.f32 %v2248_v28, %v3011_v14 }
 0x330   : > { %v2250_v0 = vpop.f32.mrf.mxu0 }
 0x331   : > { %v2251_v30 = vadd.f32 %v2250_v0, %v2249_v45  ;;  %1967 = vxpose.xlu0.b32.start [1/16] (narrow) %v1905_v22, 8 }
 0x332   : > { %v2252_v25 = vpop.f32.mrf.mxu0 }
 0x333   : > { %v1908_v60 = vadd.f32 %v2251_v30, %v3011_v14 }
 0x334   : > { %v2253_v31 = vpop.f32.mrf.mxu0 }
 0x335   : > { %v2254_v59 = vadd.f32 %v2253_v31, %v2252_v25  ;;  %1968 = vxpose.xlu0.b32.cont [2/16] (narrow) %v1908_v60, 8 }
 0x336   : > { %v2255_v48 = vpop.f32.mrf.mxu0 }
 0x337   : > { %v1913_v32 = vadd.f32 %v2254_v59, %v3011_v14 }
 0x338   : > { %v2256_v49 = vpop.f32.mrf.mxu0 }
 0x339   : > { %v2257_v17 = vadd.f32 %v2256_v49, %v2255_v48  ;;  %1969 = vxpose.xlu0.b32.cont [3/16] (narrow) %v1913_v32, 8 }
 0x33a   : > { %v2258_v33 = vpop.f32.mrf.mxu0 }
 0x33b   : > { %v1916_v53 = vadd.f32 %v2257_v17, %v3011_v14 }
 0x33c   : > { %v2259_v34 = vpop.f32.mrf.mxu0 }
 0x33d   : > { %v2260_v54 = vadd.f32 %v2259_v34, %v2258_v33  ;;  %1970 = vxpose.xlu0.b32.cont [4/16] (narrow) %v1916_v53, 8 }
 0x33e   : > { %v2261_v18 = vpop.f32.mrf.mxu0  ;;  %v2270_v19 = vpop.f32.mrf.mxu1 }
 0x33f   : > { %v1921_v26 = vadd.f32 %v2260_v54, %v3011_v14 }
 0x340   : > { %v2262_v55 = vpop.f32.mrf.mxu0  ;;  %v2271_v29 = vpop.f32.mrf.mxu1 }
 0x341   : > { %v2263_v56 = vadd.f32 %v2262_v55, %v2261_v18  ;;  %1971 = vxpose.xlu0.b32.cont [5/16] (narrow) %v1921_v26, 8  ;;  %v2272_v42 = vadd.f32 %v2271_v29, %v2270_v19 }
 0x342   : > { %v2264_v35 = vpop.f32.mrf.mxu0  ;;  %v2273_v36 = vpop.f32.mrf.mxu1 }
 0x343   : > { %v1924_v41 = vadd.f32 %v2263_v56, %v3011_v14  ;;  %v1937_v2 = vadd.f32 %v2272_v42, %v3011_v14 }
 0x344   : > { %v2265_v46 = vpop.f32.mrf.mxu0  ;;  %v2274_v52 = vpop.f32.mrf.mxu1 }
 0x345   : > { %v2266_v37 = vadd.f32 %v2265_v46, %v2264_v35  ;;  %1972 = vxpose.xlu0.b32.cont [6/16] (narrow) %v1924_v41, 8  ;;  %v2275_v40 = vadd.f32 %v2274_v52, %v2273_v36 }
 0x346   : > { %v2267_v20 = vpop.f32.mrf.mxu0  ;;  %v2276_v23 = vpop.f32.mrf.mxu1 }
 0x347   : > { %v1929_v38 = vadd.f32 %v2266_v37, %v3011_v14  ;;  %v1940_v51 = vadd.f32 %v2275_v40, %v3011_v14 }
 0x348   : > { %v2268_v57 = vpop.f32.mrf.mxu0  ;;  %v2277_v39 = vpop.f32.mrf.mxu1 }
 0x349   : > { %v2269_v62 = vadd.f32 %v2268_v57, %v2267_v20  ;;  %1973 = vxpose.xlu0.b32.cont [7/16] (narrow) %v1929_v38, 8  ;;  %v2278_v63 = vadd.f32 %v2277_v39, %v2276_v23 }
 0x34a   : > { %v2279_v24 = vpop.f32.mrf.mxu1 }
 0x34b   : > { %v1932_v6 = vadd.f32 %v2269_v62, %v3011_v14  ;;  %v1945_v50 = vadd.f32 %v2278_v63, %v3011_v14 }
 0x34c   : > { %v2280_v7 = vpop.f32.mrf.mxu1 }
 0x34d   : > { %1974 = vxpose.xlu0.b32.cont [8/16] (narrow) %v1932_v6, 8  ;;  %v2281_v58 = vadd.f32 %v2280_v7, %v2279_v24 }
 0x34e   : > { %v2282_v44 = vpop.f32.mrf.mxu1 }
 0x34f   : > { %v1948_v9 = vadd.f32 %v2281_v58, %v3011_v14 }
 0x350   : > { %v2283_v8 = vpop.f32.mrf.mxu1 }
 0x351   : > { %1975 = vxpose.xlu0.b32.cont [9/16] (narrow) %v1937_v2, 8  ;;  %v2284_v5 = vadd.f32 %v2283_v8, %v2282_v44 }
 0x352   : > { %v2285_v47 = vpop.f32.mrf.mxu1 }
 0x353   : > { %v1953_v10 = vadd.f32 %v2284_v5, %v3011_v14 }
 0x354   : > { %v2286_v3 = vpop.f32.mrf.mxu1 }
 0x355   : > { %1976 = vxpose.xlu0.b32.cont [10/16] (narrow) %v1940_v51, 8  ;;  %v2287_v43 = vadd.f32 %v2286_v3, %v2285_v47 }
 0x356   : > { %v2288_v4 = vpop.f32.mrf.mxu1 }
 0x357   : > { %v1956_v61 = vadd.f32 %v2287_v43, %v3011_v14 }
 0x358   : > { %v2289_v27 = vpop.f32.mrf.mxu1 }
 0x359   : > { %1977 = vxpose.xlu0.b32.cont [11/16] (narrow) %v1945_v50, 8  ;;  %v2290_v11 = vadd.f32 %v2289_v27, %v2288_v4 }
 0x35a   : > { %v2291_v13 = vpop.f32.mrf.mxu1 }
 0x35b   : > { %v1961_v21 = vadd.f32 %v2290_v11, %v3011_v14 }
 0x35c   : > { %v2292_v12 = vpop.f32.mrf.mxu1 }
 0x35d   : > { %1978 = vxpose.xlu0.b32.cont [12/16] (narrow) %v1948_v9, 8  ;;  %v2293_v15 = vadd.f32 %v2292_v12, %v2291_v13 }
 0x35f   : > { %v1964_v1 = vadd.f32 %v2293_v15, %v3011_v14 }
 0x361   : > { %1979 = vxpose.xlu0.b32.cont [13/16] (narrow) %v1953_v10, 8 }
 0x365   : > { %1980 = vxpose.xlu0.b32.cont [14/16] (narrow) %v1956_v61, 8 }
 0x369   : > { %1981 = vxpose.xlu0.b32.cont [15/16] (narrow) %v1961_v21, 8 }
 0x36d   : > { %1982 = vxpose.xlu0.b32.end [16/16] (narrow) %v1964_v1, 8 }
 0x3ad   : > { %v1983_v16 = vpop.trf.xlu0 }
 0x3ae   : > { %1999 = vst [vmem:[%s2751_s20] sm:$0xff] %v1983_v16 }
 0x3af PF: > { %s20_s29 = sadd.s32 1, %s2610_s29   ;;  %s3052_s27 = smov %s2606_s28 }
 0x3b0   : > { %p17_p10 = scmp.ge.s32.totalorder %s20_s29, 4   ;;  %s3053_s28 = smov %s3055_s14 }
 0x3b2   :  { %19 = sbr.rel (!%p17_p10) target bundleno = 3 (0x3), region = 109 }
 0x3b7   :  { %2028 = vsyncpa [#allocation6], 1 }
 0x3b8   :  { %2030 = vsyncpa [#allocation6 + $0x1], 1 }
 0x3b9   :  { %2031 = vsyncpa [#allocation8], 1 }

</bundles_post_ra>
